<compile_context>
chip_gen: v7x
topology: tpu7x:2x2x1
jax: 0.10.0
libtpu: 0.0.40
codegen_flags: <defaults>
</compile_context>

<pallas_src>
import functools
import math

import jax
import jax.numpy as jnp
from jax import lax
from jax.experimental import pallas as pl
from jax.experimental.pallas import tpu as pltpu

# ----------------------------- config (small, synthetic) --------------------
VOCAB = 128
BLOCK_SIZE = 16
N_LAYER = 2
N_HEAD = 2
N_EMBD = 32
HEAD_DIM = N_EMBD // N_HEAD
MLP_DIM = 4 * N_EMBD
LN_EPS = 1e-5

# side-parameter slab layout: 8 rows per layer + 2 final rows, all rows padded
# to MLP_DIM (=128) lanes.
_ROWS_PER_LAYER = 8
_R_LN1W, _R_LN1B, _R_BQKV, _R_BO, _R_LN2W, _R_LN2B, _R_BFC, _R_BPR = range(8)
_SIDE_ROWS = _ROWS_PER_LAYER * N_LAYER + 2


# ----------------------------- in-kernel math helpers -----------------------
def _erf(x):
    # Abramowitz & Stegun 7.1.26: |error| < 1.5e-7; built from exp/mul/add only.
    a1, a2, a3, a4, a5 = 0.254829592, -0.284496736, 1.421413741, -1.453152027, 1.061405429
    p = 0.3275911
    ax = jnp.abs(x)
    t = 1.0 / (1.0 + p * ax)
    poly = ((((a5 * t + a4) * t + a3) * t + a2) * t + a1) * t
    y = 1.0 - poly * jnp.exp(-ax * ax)
    return jnp.where(x >= 0, y, -y)


def _gelu(x):
    # exact (erf-based) GELU, matching torch.nn.GELU() default
    return 0.5 * x * (1.0 + _erf(x * (1.0 / math.sqrt(2.0))))


def _layernorm(x, w, b):
    mean = jnp.mean(x, axis=-1, keepdims=True)
    xc = x - mean
    var = jnp.mean(xc * xc, axis=-1, keepdims=True)
    inv = lax.rsqrt(var + LN_EPS)
    return xc * inv * w + b


# ----------------------------- fused forward kernel -------------------------
def gpt_kernel(B, T,
               idx_ref, wte_ref, pos_ref,
               wqkv_ref, wo_ref, wfc_ref, wpr_ref, whead_ref, side_ref,
               o_ref):
    bf16, f32 = jnp.bfloat16, jnp.float32
    C, H, D = N_EMBD, N_HEAD, HEAD_DIM
    BT = B * T

    side = side_ref[...]                                   # (18, 128) f32

    # token embedding: bf16 one-hot @ bf16 wte, f32 accumulate (V=128 lane-dense)
    one_hot = (idx_ref[...] ==
               lax.broadcasted_iota(jnp.int32, (BT, VOCAB), 1)).astype(bf16)
    x = jnp.dot(one_hot, wte_ref[...], preferred_element_type=f32)
    x = x + pos_ref[...]                                   # (BT, C) f32 residual stream

    # additive causal-mask bias, built once (finite fill: no NaN risk)
    row = lax.broadcasted_iota(jnp.int32, (T, T), 0)
    col = lax.broadcasted_iota(jnp.int32, (T, T), 1)
    mask_bias = jnp.where(row >= col, 0.0, -1e30).astype(f32)[None]   # (1, T, T)
    scale = 1.0 / math.sqrt(D)

    for l in range(N_LAYER):                               # static unrolled layer loop
        base = l * _ROWS_PER_LAYER
        ln1w = side[base + _R_LN1W:base + _R_LN1W + 1, :C]
        ln1b = side[base + _R_LN1B:base + _R_LN1B + 1, :C]
        bqkv = side[base + _R_BQKV:base + _R_BQKV + 1, :3 * C]
        bo   = side[base + _R_BO:base + _R_BO + 1, :C]
        ln2w = side[base + _R_LN2W:base + _R_LN2W + 1, :C]
        ln2b = side[base + _R_LN2B:base + _R_LN2B + 1, :C]
        bfc  = side[base + _R_BFC:base + _R_BFC + 1, :MLP_DIM]
        bpr  = side[base + _R_BPR:base + _R_BPR + 1, :C]

        # ---- ln_1 + causal self-attention (single fused (C,3C) QKV matmul) ----
        h1 = _layernorm(x, ln1w, ln1b).astype(bf16)
        qkv = jnp.dot(h1, wqkv_ref[l], preferred_element_type=f32) + bqkv   # (BT, 3C)
        qkv3 = qkv.reshape(B, T, 3 * C)                    # cheap leading-dim split

        heads = []
        for h in range(H):                                 # H=2, static unrolled
            q_h = qkv3[:, :, 0 * C + h * D: 0 * C + (h + 1) * D].astype(bf16)
            k_h = qkv3[:, :, 1 * C + h * D: 1 * C + (h + 1) * D].astype(bf16)
            v_h = qkv3[:, :, 2 * C + h * D: 2 * C + (h + 1) * D].astype(bf16)
            att = jnp.einsum('bqd,bkd->bqk', q_h, k_h,
                             preferred_element_type=f32) * scale + mask_bias
            att = att - jnp.max(att, axis=-1, keepdims=True)
            p = jnp.exp(att)
            p = p * pl.reciprocal(jnp.sum(p, axis=-1, keepdims=True), approx=True)
            heads.append(jnp.einsum('bqk,bkd->bqd', p.astype(bf16), v_h,
                                    preferred_element_type=f32))
        # head merge = one cheap lane concat, then ONE output projection matmul
        y = jnp.concatenate(heads, axis=-1).reshape(BT, C)
        attn_out = jnp.dot(y.astype(bf16), wo_ref[l],
                           preferred_element_type=f32) + bo
        x = x + attn_out

        # ---- ln_2 + MLP ----
        h2 = _layernorm(x, ln2w, ln2b).astype(bf16)
        hfc = jnp.dot(h2, wfc_ref[l], preferred_element_type=f32) + bfc
        hfc = _gelu(hfc).astype(bf16)                      # GELU in f32, cast after
        x = x + (jnp.dot(hfc, wpr_ref[l], preferred_element_type=f32) + bpr)

    # ---- ln_f + lm_head (V=128 -> lane-dense store) ----
    fbase = N_LAYER * _ROWS_PER_LAYER
    lnfw = side[fbase + 0:fbase + 1, :C]
    lnfb = side[fbase + 1:fbase + 2, :C]
    hf = _layernorm(x, lnfw, lnfb).astype(bf16)
    o_ref[...] = jnp.dot(hf, whead_ref[...], preferred_element_type=f32)


# ----------------------------- wrappers --------------------------------------
def prepare_params(params):
    """Stack per-layer matmul weights (bf16), and pack all the tiny f32 side
    params (LN weights/biases + all linear biases) into one (18,128) slab."""
    bf16 = jnp.bfloat16

    def stack(key):
        return jnp.stack([blk[key] for blk in params['blocks']])

    def pad_row(v):
        v = jnp.asarray(v, jnp.float32).reshape(-1)
        return jnp.pad(v, (0, MLP_DIM - v.shape[0]))

    side_rows = []
    for blk in params['blocks']:
        side_rows += [pad_row(blk['ln1_w']), pad_row(blk['ln1_b']),
                      pad_row(blk['b_qkv']), pad_row(blk['b_attn_proj']),
                      pad_row(blk['ln2_w']), pad_row(blk['ln2_b']),
                      pad_row(blk['b_fc']), pad_row(blk['b_mlp_proj'])]
    side_rows += [pad_row(params['lnf_w']), pad_row(params['lnf_b'])]
    side = jnp.stack(side_rows)                            # (18, 128) f32
    assert side.shape == (_SIDE_ROWS, MLP_DIM)

    return dict(
        wte=params['wte'].astype(bf16),                    # (V, C)
        wpe=params['wpe'],                                 # (BLOCK_SIZE, C) f32
        wqkv=stack('w_qkv').astype(bf16),                  # (L, C, 3C) fused QKV
        wo=stack('w_attn_proj').astype(bf16),              # (L, C, C)
        wfc=stack('w_fc').astype(bf16),                    # (L, C, 4C)
        wpr=stack('w_mlp_proj').astype(bf16),              # (L, 4C, C)
        whead=params['w_head'].astype(bf16),               # (C, V), tied to wte
        side=side,
    )


def _gpt_forward_impl(idx, prep):
    b, t = idx.shape
    assert t <= BLOCK_SIZE
    bt = b * t
    idx2 = idx.astype(jnp.int32).reshape(bt, 1)
    pos_bt = jnp.tile(prep['wpe'][:t], (b, 1))             # (BT, C) f32

    inputs = (idx2, prep['wte'], pos_bt, prep['wqkv'], prep['wo'],
              prep['wfc'], prep['wpr'], prep['whead'], prep['side'])

    # No grid: one fused program, every array whole-resident in VMEM
    # (single-buffered; at these toy dims total VMEM use is a few tens of KiB).
    in_specs = [pl.BlockSpec(memory_space=pltpu.MemorySpace.VMEM)
                for _ in inputs]
    out_spec = pl.BlockSpec(memory_space=pltpu.MemorySpace.VMEM)

    logits = pl.pallas_call(
        functools.partial(gpt_kernel, b, t),
        out_shape=jax.ShapeDtypeStruct((bt, VOCAB), jnp.float32),
        in_specs=in_specs,
        out_specs=out_spec,
    )(*inputs)
    return logits.reshape(b, t, VOCAB)


_gpt_forward_jit = jax.jit(_gpt_forward_impl)


def gpt_forward(idx, prep, targets=None):
    logits = _gpt_forward_jit(idx, prep)
    loss = None  # forward is called with targets=None (matches reference path)
    return logits, loss


# ----------------------------- deterministic init ----------------------------
def init_params(key):
    std = 0.02
    proj_std = 0.02 / math.sqrt(2 * N_LAYER)
    n_keys = 2 + N_LAYER * 4
    keys = iter(jax.random.split(key, n_keys))

    def normal(k, shape, s):
        return jax.random.normal(k, shape, dtype=jnp.float32) * s

    wte = normal(next(keys), (VOCAB, N_EMBD), std)
    wpe = normal(next(keys), (BLOCK_SIZE, N_EMBD), std)

    blocks = []
    for _ in range(N_LAYER):
        blocks.append(dict(
            ln1_w=jnp.ones((1, N_EMBD), jnp.float32),
            ln1_b=jnp.zeros((1, N_EMBD), jnp.float32),
            w_qkv=normal(next(keys), (N_EMBD, 3 * N_EMBD), std),     # x @ W layout
            b_qkv=jnp.zeros((1, 3 * N_EMBD), jnp.float32),
            w_attn_proj=normal(next(keys), (N_EMBD, N_EMBD), proj_std),
            b_attn_proj=jnp.zeros((1, N_EMBD), jnp.float32),
            ln2_w=jnp.ones((1, N_EMBD), jnp.float32),
            ln2_b=jnp.zeros((1, N_EMBD), jnp.float32),
            w_fc=normal(next(keys), (N_EMBD, 4 * N_EMBD), std),
            b_fc=jnp.zeros((1, 4 * N_EMBD), jnp.float32),
            w_mlp_proj=normal(next(keys), (4 * N_EMBD, N_EMBD), proj_std),
            b_mlp_proj=jnp.zeros((1, N_EMBD), jnp.float32),
        ))

    return dict(
        wte=wte,
        wpe=wpe,
        blocks=blocks,
        lnf_w=jnp.ones((1, N_EMBD), jnp.float32),
        lnf_b=jnp.zeros((1, N_EMBD), jnp.float32),
        w_head=wte.T,                                # weight tying: lm_head = wte
    )


# ----------------------------- main ------------------------------------------
if __name__ == "__main__":
    key = jax.random.PRNGKey(0)
    pkey, dkey = jax.random.split(key)
    params = init_params(pkey)
    prep = prepare_params(params)

    B, T = 2, 8
    idx = jax.random.randint(dkey, (B, T), 0, VOCAB, dtype=jnp.int32)

    logits, loss = gpt_forward(idx, prep)
    logits = jax.block_until_ready(logits)

    assert logits.shape == (B, T, VOCAB), logits.shape
    assert logits.dtype == jnp.float32
    assert loss is None
    assert bool(jnp.all(jnp.isfinite(logits)))
    print("KERNEL_OK")
</pallas_src>

<mosaic_0001>
module attributes {stable_mosaic.version = 11 : i64} {
  func.func @gpt_kernel(%arg0: memref<16x1xi32, #tpu.memory_space<vmem>>, %arg1: memref<128x32xbf16, #tpu.memory_space<vmem>>, %arg2: memref<16x32xf32, #tpu.memory_space<vmem>>, %arg3: memref<2x32x96xbf16, #tpu.memory_space<vmem>>, %arg4: memref<2x32x32xbf16, #tpu.memory_space<vmem>>, %arg5: memref<2x32x128xbf16, #tpu.memory_space<vmem>>, %arg6: memref<2x128x32xbf16, #tpu.memory_space<vmem>>, %arg7: memref<32x128xbf16, #tpu.memory_space<vmem>>, %arg8: memref<18x128xf32, #tpu.memory_space<vmem>>, %arg9: memref<16x128xf32, #tpu.memory_space<vmem>>) attributes {dimension_semantics = [], scalar_prefetch = 0 : i64, scratch_operands = 0 : i64, tpu.core_type = #tpu.core_type<tc>} {
    %c0 = arith.constant 0 : index
    %c0_0 = arith.constant 0 : index
    %0 = vector.load %arg8[%c0, %c0_0] : memref<18x128xf32, #tpu.memory_space<vmem>>, vector<18x128xf32>
    %c0_1 = arith.constant 0 : index
    %c0_2 = arith.constant 0 : index
    %1 = vector.load %arg0[%c0_1, %c0_2] : memref<16x1xi32, #tpu.memory_space<vmem>>, vector<16x1xi32>
    %2 = tpu.iota {dimensions = array<i32: 1>} : vector<16x128xi32>
    %3 = vector.broadcast %1 : vector<16x1xi32> to vector<16x128xi32>
    %4 = arith.cmpi eq, %3, %2 : vector<16x128xi32>
    %5 = arith.extui %4 : vector<16x128xi1> to vector<16x128xi32>
    %6 = arith.sitofp %5 : vector<16x128xi32> to vector<16x128xf32>
    %7 = arith.truncf %6 : vector<16x128xf32> to vector<16x128xbf16>
    %c0_3 = arith.constant 0 : index
    %c0_4 = arith.constant 0 : index
    %8 = vector.load %arg1[%c0_3, %c0_4] : memref<128x32xbf16, #tpu.memory_space<vmem>>, vector<128x32xbf16>
    %cst = arith.constant dense<0.000000e+00> : vector<16x32xf32>
    %9 = tpu.matmul %7, %8, %cst {dimension_numbers = #tpu.dot_dimension_numbers<[1], [0], [0], [1], [0, 0, 1, 1], [], []>} : vector<16x128xbf16>, vector<128x32xbf16>, vector<16x32xf32> -> vector<16x32xf32>
    %c0_5 = arith.constant 0 : index
    %c0_6 = arith.constant 0 : index
    %10 = vector.load %arg2[%c0_5, %c0_6] : memref<16x32xf32, #tpu.memory_space<vmem>>, vector<16x32xf32>
    %11 = arith.addf %9, %10 : vector<16x32xf32>
    %12 = tpu.iota {dimensions = array<i32: 0>} : vector<8x8xi32>
    %13 = tpu.iota {dimensions = array<i32: 1>} : vector<8x8xi32>
    %14 = arith.cmpi sge, %12, %13 : vector<8x8xi32>
    %cst_7 = arith.constant 0.000000e+00 : f32
    %cst_8 = arith.constant -1.000000e+30 : f32
    %15 = vector.broadcast %cst_7 : f32 to vector<8x8xf32>
    %16 = vector.broadcast %cst_8 : f32 to vector<8x8xf32>
    %17 = arith.select %14, %15, %16 : vector<8x8xi1>, vector<8x8xf32>
    %18 = vector.shape_cast %17 : vector<8x8xf32> to vector<1x8x8xf32>
    %19 = vector.extract_strided_slice %0 {offsets = [0, 0], sizes = [1, 32], strides = [1, 1]} : vector<18x128xf32> to vector<1x32xf32>
    %20 = vector.extract_strided_slice %0 {offsets = [1, 0], sizes = [1, 32], strides = [1, 1]} : vector<18x128xf32> to vector<1x32xf32>
    %21 = vector.extract_strided_slice %0 {offsets = [2, 0], sizes = [1, 96], strides = [1, 1]} : vector<18x128xf32> to vector<1x96xf32>
    %22 = vector.extract_strided_slice %0 {offsets = [3, 0], sizes = [1, 32], strides = [1, 1]} : vector<18x128xf32> to vector<1x32xf32>
    %23 = vector.extract_strided_slice %0 {offsets = [4, 0], sizes = [1, 32], strides = [1, 1]} : vector<18x128xf32> to vector<1x32xf32>
    %24 = vector.extract_strided_slice %0 {offsets = [5, 0], sizes = [1, 32], strides = [1, 1]} : vector<18x128xf32> to vector<1x32xf32>
    %25 = vector.extract_strided_slice %0 {offsets = [6, 0], sizes = [1, 128], strides = [1, 1]} : vector<18x128xf32> to vector<1x128xf32>
    %26 = vector.extract_strided_slice %0 {offsets = [7, 0], sizes = [1, 32], strides = [1, 1]} : vector<18x128xf32> to vector<1x32xf32>
    %cst_9 = arith.constant dense<0.000000e+00> : vector<16xf32>
    %27 = vector.multi_reduction <add>, %11, %cst_9 [1] : vector<16x32xf32> to vector<16xf32>
    %28 = vector.shape_cast %27 : vector<16xf32> to vector<16x1xf32>
    %cst_10 = arith.constant 3.200000e+01 : f32
    %29 = vector.broadcast %cst_10 : f32 to vector<16x1xf32>
    %30 = arith.divf %28, %29 : vector<16x1xf32>
    %31 = vector.broadcast %30 : vector<16x1xf32> to vector<16x32xf32>
    %32 = arith.subf %11, %31 : vector<16x32xf32>
    %33 = arith.mulf %32, %32 : vector<16x32xf32>
    %cst_11 = arith.constant dense<0.000000e+00> : vector<16xf32>
    %34 = vector.multi_reduction <add>, %33, %cst_11 [1] : vector<16x32xf32> to vector<16xf32>
    %35 = vector.shape_cast %34 : vector<16xf32> to vector<16x1xf32>
    %cst_12 = arith.constant 3.200000e+01 : f32
    %36 = vector.broadcast %cst_12 : f32 to vector<16x1xf32>
    %37 = arith.divf %35, %36 : vector<16x1xf32>
    %cst_13 = arith.constant 9.99999974E-6 : f32
    %38 = vector.broadcast %cst_13 : f32 to vector<16x1xf32>
    %39 = arith.addf %37, %38 : vector<16x1xf32>
    %40 = math.rsqrt %39 : vector<16x1xf32>
    %41 = vector.broadcast %40 : vector<16x1xf32> to vector<16x32xf32>
    %42 = arith.mulf %32, %41 : vector<16x32xf32>
    %43 = vector.broadcast %19 : vector<1x32xf32> to vector<16x32xf32>
    %44 = arith.mulf %42, %43 : vector<16x32xf32>
    %45 = vector.broadcast %20 : vector<1x32xf32> to vector<16x32xf32>
    %46 = arith.addf %44, %45 : vector<16x32xf32>
    %47 = arith.truncf %46 : vector<16x32xf32> to vector<16x32xbf16>
    %c0_14 = arith.constant 0 : index
    %c0_15 = arith.constant 0 : index
    %c0_16 = arith.constant 0 : index
    %48 = vector.load %arg3[%c0_14, %c0_15, %c0_16] : memref<2x32x96xbf16, #tpu.memory_space<vmem>>, vector<1x32x96xbf16>
    %49 = vector.shape_cast %48 : vector<1x32x96xbf16> to vector<32x96xbf16>
    %cst_17 = arith.constant dense<0.000000e+00> : vector<16x96xf32>
    %50 = tpu.matmul %47, %49, %cst_17 {dimension_numbers = #tpu.dot_dimension_numbers<[1], [0], [0], [1], [0, 0, 1, 1], [], []>} : vector<16x32xbf16>, vector<32x96xbf16>, vector<16x96xf32> -> vector<16x96xf32>
    %51 = vector.broadcast %21 : vector<1x96xf32> to vector<16x96xf32>
    %52 = arith.addf %50, %51 : vector<16x96xf32>
    %53 = vector.shape_cast %52 : vector<16x96xf32> to vector<2x8x96xf32>
    %54 = vector.extract_strided_slice %53 {offsets = [0, 0, 0], sizes = [2, 8, 16], strides = [1, 1, 1]} : vector<2x8x96xf32> to vector<2x8x16xf32>
    %55 = arith.truncf %54 : vector<2x8x16xf32> to vector<2x8x16xbf16>
    %56 = vector.extract_strided_slice %53 {offsets = [0, 0, 32], sizes = [2, 8, 16], strides = [1, 1, 1]} : vector<2x8x96xf32> to vector<2x8x16xf32>
    %57 = arith.truncf %56 : vector<2x8x16xf32> to vector<2x8x16xbf16>
    %58 = vector.extract_strided_slice %53 {offsets = [0, 0, 64], sizes = [2, 8, 16], strides = [1, 1, 1]} : vector<2x8x96xf32> to vector<2x8x16xf32>
    %59 = arith.truncf %58 : vector<2x8x16xf32> to vector<2x8x16xbf16>
    "tpu.trace_start"() <{level = 10 : i32, message = "bqd,bkd->bqk"}> : () -> ()
    %cst_18 = arith.constant dense<0.000000e+00> : vector<2x8x8xf32>
    %60 = tpu.matmul %55, %57, %cst_18 {dimension_numbers = #tpu.dot_dimension_numbers<[2], [2], [1], [1], [0, 0, 0, 1, 1, 1], [0], [0]>} : vector<2x8x16xbf16>, vector<2x8x16xbf16>, vector<2x8x8xf32> -> vector<2x8x8xf32>
    "tpu.trace_stop"() : () -> ()
    %cst_19 = arith.constant 2.500000e-01 : f32
    %61 = vector.broadcast %cst_19 : f32 to vector<2x8x8xf32>
    %62 = arith.mulf %60, %61 : vector<2x8x8xf32>
    %63 = vector.broadcast %18 : vector<1x8x8xf32> to vector<2x8x8xf32>
    %64 = arith.addf %62, %63 : vector<2x8x8xf32>
    %cst_20 = arith.constant dense<0xFF800000> : vector<2x8xf32>
    %65 = vector.multi_reduction <maximumf>, %64, %cst_20 [2] : vector<2x8x8xf32> to vector<2x8xf32>
    %66 = vector.shape_cast %65 : vector<2x8xf32> to vector<2x8x1xf32>
    %67 = vector.broadcast %66 : vector<2x8x1xf32> to vector<2x8x8xf32>
    %68 = arith.subf %64, %67 : vector<2x8x8xf32>
    %69 = math.exp %68 : vector<2x8x8xf32>
    %cst_21 = arith.constant dense<0.000000e+00> : vector<2x8xf32>
    %70 = vector.multi_reduction <add>, %69, %cst_21 [2] : vector<2x8x8xf32> to vector<2x8xf32>
    %71 = vector.shape_cast %70 : vector<2x8xf32> to vector<2x8x1xf32>
    %72 = tpu.reciprocal %71 {approx = true} : vector<2x8x1xf32> -> vector<2x8x1xf32>
    %73 = vector.broadcast %72 : vector<2x8x1xf32> to vector<2x8x8xf32>
    %74 = arith.mulf %69, %73 : vector<2x8x8xf32>
    %75 = arith.truncf %74 : vector<2x8x8xf32> to vector<2x8x8xbf16>
    "tpu.trace_start"() <{level = 10 : i32, message = "bqk,bkd->bqd"}> : () -> ()
    %cst_22 = arith.constant dense<0.000000e+00> : vector<2x8x16xf32>
    %76 = tpu.matmul %75, %59, %cst_22 {dimension_numbers = #tpu.dot_dimension_numbers<[2], [1], [1], [2], [0, 0, 0, 1, 1, 2], [0], [0]>} : vector<2x8x8xbf16>, vector<2x8x16xbf16>, vector<2x8x16xf32> -> vector<2x8x16xf32>
    "tpu.trace_stop"() : () -> ()
    %77 = vector.extract_strided_slice %53 {offsets = [0, 0, 16], sizes = [2, 8, 16], strides = [1, 1, 1]} : vector<2x8x96xf32> to vector<2x8x16xf32>
    %78 = arith.truncf %77 : vector<2x8x16xf32> to vector<2x8x16xbf16>
    %79 = vector.extract_strided_slice %53 {offsets = [0, 0, 48], sizes = [2, 8, 16], strides = [1, 1, 1]} : vector<2x8x96xf32> to vector<2x8x16xf32>
    %80 = arith.truncf %79 : vector<2x8x16xf32> to vector<2x8x16xbf16>
    %81 = vector.extract_strided_slice %53 {offsets = [0, 0, 80], sizes = [2, 8, 16], strides = [1, 1, 1]} : vector<2x8x96xf32> to vector<2x8x16xf32>
    %82 = arith.truncf %81 : vector<2x8x16xf32> to vector<2x8x16xbf16>
    "tpu.trace_start"() <{level = 10 : i32, message = "bqd,bkd->bqk"}> : () -> ()
    %cst_23 = arith.constant dense<0.000000e+00> : vector<2x8x8xf32>
    %83 = tpu.matmul %78, %80, %cst_23 {dimension_numbers = #tpu.dot_dimension_numbers<[2], [2], [1], [1], [0, 0, 0, 1, 1, 1], [0], [0]>} : vector<2x8x16xbf16>, vector<2x8x16xbf16>, vector<2x8x8xf32> -> vector<2x8x8xf32>
    "tpu.trace_stop"() : () -> ()
    %cst_24 = arith.constant 2.500000e-01 : f32
    %84 = vector.broadcast %cst_24 : f32 to vector<2x8x8xf32>
    %85 = arith.mulf %83, %84 : vector<2x8x8xf32>
    %86 = vector.broadcast %18 : vector<1x8x8xf32> to vector<2x8x8xf32>
    %87 = arith.addf %85, %86 : vector<2x8x8xf32>
    %cst_25 = arith.constant dense<0xFF800000> : vector<2x8xf32>
    %88 = vector.multi_reduction <maximumf>, %87, %cst_25 [2] : vector<2x8x8xf32> to vector<2x8xf32>
    %89 = vector.shape_cast %88 : vector<2x8xf32> to vector<2x8x1xf32>
    %90 = vector.broadcast %89 : vector<2x8x1xf32> to vector<2x8x8xf32>
    %91 = arith.subf %87, %90 : vector<2x8x8xf32>
    %92 = math.exp %91 : vector<2x8x8xf32>
    %cst_26 = arith.constant dense<0.000000e+00> : vector<2x8xf32>
    %93 = vector.multi_reduction <add>, %92, %cst_26 [2] : vector<2x8x8xf32> to vector<2x8xf32>
    %94 = vector.shape_cast %93 : vector<2x8xf32> to vector<2x8x1xf32>
    %95 = tpu.reciprocal %94 {approx = true} : vector<2x8x1xf32> -> vector<2x8x1xf32>
    %96 = vector.broadcast %95 : vector<2x8x1xf32> to vector<2x8x8xf32>
    %97 = arith.mulf %92, %96 : vector<2x8x8xf32>
    %98 = arith.truncf %97 : vector<2x8x8xf32> to vector<2x8x8xbf16>
    "tpu.trace_start"() <{level = 10 : i32, message = "bqk,bkd->bqd"}> : () -> ()
    %cst_27 = arith.constant dense<0.000000e+00> : vector<2x8x16xf32>
    %99 = tpu.matmul %98, %82, %cst_27 {dimension_numbers = #tpu.dot_dimension_numbers<[2], [1], [1], [2], [0, 0, 0, 1, 1, 2], [0], [0]>} : vector<2x8x8xbf16>, vector<2x8x16xbf16>, vector<2x8x16xf32> -> vector<2x8x16xf32>
    "tpu.trace_stop"() : () -> ()
    %100 = tpu.concatenate %76, %99 in 2 : vector<2x8x16xf32>, vector<2x8x16xf32> -> vector<2x8x32xf32>
    %101 = vector.shape_cast %100 : vector<2x8x32xf32> to vector<16x32xf32>
    %102 = arith.truncf %101 : vector<16x32xf32> to vector<16x32xbf16>
    %c0_28 = arith.constant 0 : index
    %c0_29 = arith.constant 0 : index
    %c0_30 = arith.constant 0 : index
    %103 = vector.load %arg4[%c0_28, %c0_29, %c0_30] : memref<2x32x32xbf16, #tpu.memory_space<vmem>>, vector<1x32x32xbf16>
    %104 = vector.shape_cast %103 : vector<1x32x32xbf16> to vector<32x32xbf16>
    %cst_31 = arith.constant dense<0.000000e+00> : vector<16x32xf32>
    %105 = tpu.matmul %102, %104, %cst_31 {dimension_numbers = #tpu.dot_dimension_numbers<[1], [0], [0], [1], [0, 0, 1, 1], [], []>} : vector<16x32xbf16>, vector<32x32xbf16>, vector<16x32xf32> -> vector<16x32xf32>
    %106 = vector.broadcast %22 : vector<1x32xf32> to vector<16x32xf32>
    %107 = arith.addf %105, %106 : vector<16x32xf32>
    %108 = arith.addf %11, %107 : vector<16x32xf32>
    %cst_32 = arith.constant dense<0.000000e+00> : vector<16xf32>
    %109 = vector.multi_reduction <add>, %108, %cst_32 [1] : vector<16x32xf32> to vector<16xf32>
    %110 = vector.shape_cast %109 : vector<16xf32> to vector<16x1xf32>
    %cst_33 = arith.constant 3.200000e+01 : f32
    %111 = vector.broadcast %cst_33 : f32 to vector<16x1xf32>
    %112 = arith.divf %110, %111 : vector<16x1xf32>
    %113 = vector.broadcast %112 : vector<16x1xf32> to vector<16x32xf32>
    %114 = arith.subf %108, %113 : vector<16x32xf32>
    %115 = arith.mulf %114, %114 : vector<16x32xf32>
    %cst_34 = arith.constant dense<0.000000e+00> : vector<16xf32>
    %116 = vector.multi_reduction <add>, %115, %cst_34 [1] : vector<16x32xf32> to vector<16xf32>
    %117 = vector.shape_cast %116 : vector<16xf32> to vector<16x1xf32>
    %cst_35 = arith.constant 3.200000e+01 : f32
    %118 = vector.broadcast %cst_35 : f32 to vector<16x1xf32>
    %119 = arith.divf %117, %118 : vector<16x1xf32>
    %cst_36 = arith.constant 9.99999974E-6 : f32
    %120 = vector.broadcast %cst_36 : f32 to vector<16x1xf32>
    %121 = arith.addf %119, %120 : vector<16x1xf32>
    %122 = math.rsqrt %121 : vector<16x1xf32>
    %123 = vector.broadcast %122 : vector<16x1xf32> to vector<16x32xf32>
    %124 = arith.mulf %114, %123 : vector<16x32xf32>
    %125 = vector.broadcast %23 : vector<1x32xf32> to vector<16x32xf32>
    %126 = arith.mulf %124, %125 : vector<16x32xf32>
    %127 = vector.broadcast %24 : vector<1x32xf32> to vector<16x32xf32>
    %128 = arith.addf %126, %127 : vector<16x32xf32>
    %129 = arith.truncf %128 : vector<16x32xf32> to vector<16x32xbf16>
    %c0_37 = arith.constant 0 : index
    %c0_38 = arith.constant 0 : index
    %c0_39 = arith.constant 0 : index
    %130 = vector.load %arg5[%c0_37, %c0_38, %c0_39] : memref<2x32x128xbf16, #tpu.memory_space<vmem>>, vector<1x32x128xbf16>
    %131 = vector.shape_cast %130 : vector<1x32x128xbf16> to vector<32x128xbf16>
    %cst_40 = arith.constant dense<0.000000e+00> : vector<16x128xf32>
    %132 = tpu.matmul %129, %131, %cst_40 {dimension_numbers = #tpu.dot_dimension_numbers<[1], [0], [0], [1], [0, 0, 1, 1], [], []>} : vector<16x32xbf16>, vector<32x128xbf16>, vector<16x128xf32> -> vector<16x128xf32>
    %133 = vector.broadcast %25 : vector<1x128xf32> to vector<16x128xf32>
    %134 = arith.addf %132, %133 : vector<16x128xf32>
    %cst_41 = arith.constant 5.000000e-01 : f32
    %135 = vector.broadcast %cst_41 : f32 to vector<16x128xf32>
    %136 = arith.mulf %135, %134 : vector<16x128xf32>
    %cst_42 = arith.constant 0.707106769 : f32
    %137 = vector.broadcast %cst_42 : f32 to vector<16x128xf32>
    %138 = arith.mulf %134, %137 : vector<16x128xf32>
    %139 = math.absf %138 : vector<16x128xf32>
    %cst_43 = arith.constant 0.327591091 : f32
    %140 = vector.broadcast %cst_43 : f32 to vector<16x128xf32>
    %141 = arith.mulf %140, %139 : vector<16x128xf32>
    %cst_44 = arith.constant 1.000000e+00 : f32
    %142 = vector.broadcast %cst_44 : f32 to vector<16x128xf32>
    %143 = arith.addf %142, %141 : vector<16x128xf32>
    %cst_45 = arith.constant 1.000000e+00 : f32
    %144 = vector.broadcast %cst_45 : f32 to vector<16x128xf32>
    %145 = arith.divf %144, %143 : vector<16x128xf32>
    %cst_46 = arith.constant 1.06140542 : f32
    %146 = vector.broadcast %cst_46 : f32 to vector<16x128xf32>
    %147 = arith.mulf %146, %145 : vector<16x128xf32>
    %cst_47 = arith.constant -1.45315206 : f32
    %148 = vector.broadcast %cst_47 : f32 to vector<16x128xf32>
    %149 = arith.addf %147, %148 : vector<16x128xf32>
    %150 = arith.mulf %149, %145 : vector<16x128xf32>
    %cst_48 = arith.constant 1.42141378 : f32
    %151 = vector.broadcast %cst_48 : f32 to vector<16x128xf32>
    %152 = arith.addf %150, %151 : vector<16x128xf32>
    %153 = arith.mulf %152, %145 : vector<16x128xf32>
    %cst_49 = arith.constant -0.284496725 : f32
    %154 = vector.broadcast %cst_49 : f32 to vector<16x128xf32>
    %155 = arith.addf %153, %154 : vector<16x128xf32>
    %156 = arith.mulf %155, %145 : vector<16x128xf32>
    %cst_50 = arith.constant 0.254829586 : f32
    %157 = vector.broadcast %cst_50 : f32 to vector<16x128xf32>
    %158 = arith.addf %156, %157 : vector<16x128xf32>
    %159 = arith.mulf %158, %145 : vector<16x128xf32>
    %cst_51 = arith.constant 0.000000e+00 : f32
    %160 = vector.broadcast %cst_51 : f32 to vector<16x128xf32>
    %161 = arith.subf %160, %139 : vector<16x128xf32>
    %162 = arith.mulf %161, %139 : vector<16x128xf32>
    %163 = math.exp %162 : vector<16x128xf32>
    %164 = arith.mulf %159, %163 : vector<16x128xf32>
    %cst_52 = arith.constant 1.000000e+00 : f32
    %165 = vector.broadcast %cst_52 : f32 to vector<16x128xf32>
    %166 = arith.subf %165, %164 : vector<16x128xf32>
    %cst_53 = arith.constant 0.000000e+00 : f32
    %167 = vector.broadcast %cst_53 : f32 to vector<16x128xf32>
    %168 = arith.cmpf oge, %138, %167 : vector<16x128xf32>
    %cst_54 = arith.constant 0.000000e+00 : f32
    %169 = vector.broadcast %cst_54 : f32 to vector<16x128xf32>
    %170 = arith.subf %169, %166 : vector<16x128xf32>
    %171 = arith.select %168, %166, %170 : vector<16x128xi1>, vector<16x128xf32>
    %cst_55 = arith.constant 1.000000e+00 : f32
    %172 = vector.broadcast %cst_55 : f32 to vector<16x128xf32>
    %173 = arith.addf %172, %171 : vector<16x128xf32>
    %174 = arith.mulf %136, %173 : vector<16x128xf32>
    %175 = arith.truncf %174 : vector<16x128xf32> to vector<16x128xbf16>
    %c0_56 = arith.constant 0 : index
    %c0_57 = arith.constant 0 : index
    %c0_58 = arith.constant 0 : index
    %176 = vector.load %arg6[%c0_56, %c0_57, %c0_58] : memref<2x128x32xbf16, #tpu.memory_space<vmem>>, vector<1x128x32xbf16>
    %177 = vector.shape_cast %176 : vector<1x128x32xbf16> to vector<128x32xbf16>
    %cst_59 = arith.constant dense<0.000000e+00> : vector<16x32xf32>
    %178 = tpu.matmul %175, %177, %cst_59 {dimension_numbers = #tpu.dot_dimension_numbers<[1], [0], [0], [1], [0, 0, 1, 1], [], []>} : vector<16x128xbf16>, vector<128x32xbf16>, vector<16x32xf32> -> vector<16x32xf32>
    %179 = vector.broadcast %26 : vector<1x32xf32> to vector<16x32xf32>
    %180 = arith.addf %178, %179 : vector<16x32xf32>
    %181 = arith.addf %108, %180 : vector<16x32xf32>
    %182 = vector.extract_strided_slice %0 {offsets = [8, 0], sizes = [1, 32], strides = [1, 1]} : vector<18x128xf32> to vector<1x32xf32>
    %183 = vector.extract_strided_slice %0 {offsets = [9, 0], sizes = [1, 32], strides = [1, 1]} : vector<18x128xf32> to vector<1x32xf32>
    %184 = vector.extract_strided_slice %0 {offsets = [10, 0], sizes = [1, 96], strides = [1, 1]} : vector<18x128xf32> to vector<1x96xf32>
    %185 = vector.extract_strided_slice %0 {offsets = [11, 0], sizes = [1, 32], strides = [1, 1]} : vector<18x128xf32> to vector<1x32xf32>
    %186 = vector.extract_strided_slice %0 {offsets = [12, 0], sizes = [1, 32], strides = [1, 1]} : vector<18x128xf32> to vector<1x32xf32>
    %187 = vector.extract_strided_slice %0 {offsets = [13, 0], sizes = [1, 32], strides = [1, 1]} : vector<18x128xf32> to vector<1x32xf32>
    %188 = vector.extract_strided_slice %0 {offsets = [14, 0], sizes = [1, 128], strides = [1, 1]} : vector<18x128xf32> to vector<1x128xf32>
    %189 = vector.extract_strided_slice %0 {offsets = [15, 0], sizes = [1, 32], strides = [1, 1]} : vector<18x128xf32> to vector<1x32xf32>
    %cst_60 = arith.constant dense<0.000000e+00> : vector<16xf32>
    %190 = vector.multi_reduction <add>, %181, %cst_60 [1] : vector<16x32xf32> to vector<16xf32>
    %191 = vector.shape_cast %190 : vector<16xf32> to vector<16x1xf32>
    %cst_61 = arith.constant 3.200000e+01 : f32
    %192 = vector.broadcast %cst_61 : f32 to vector<16x1xf32>
    %193 = arith.divf %191, %192 : vector<16x1xf32>
    %194 = vector.broadcast %193 : vector<16x1xf32> to vector<16x32xf32>
    %195 = arith.subf %181, %194 : vector<16x32xf32>
    %196 = arith.mulf %195, %195 : vector<16x32xf32>
    %cst_62 = arith.constant dense<0.000000e+00> : vector<16xf32>
    %197 = vector.multi_reduction <add>, %196, %cst_62 [1] : vector<16x32xf32> to vector<16xf32>
    %198 = vector.shape_cast %197 : vector<16xf32> to vector<16x1xf32>
    %cst_63 = arith.constant 3.200000e+01 : f32
    %199 = vector.broadcast %cst_63 : f32 to vector<16x1xf32>
    %200 = arith.divf %198, %199 : vector<16x1xf32>
    %cst_64 = arith.constant 9.99999974E-6 : f32
    %201 = vector.broadcast %cst_64 : f32 to vector<16x1xf32>
    %202 = arith.addf %200, %201 : vector<16x1xf32>
    %203 = math.rsqrt %202 : vector<16x1xf32>
    %204 = vector.broadcast %203 : vector<16x1xf32> to vector<16x32xf32>
    %205 = arith.mulf %195, %204 : vector<16x32xf32>
    %206 = vector.broadcast %182 : vector<1x32xf32> to vector<16x32xf32>
    %207 = arith.mulf %205, %206 : vector<16x32xf32>
    %208 = vector.broadcast %183 : vector<1x32xf32> to vector<16x32xf32>
    %209 = arith.addf %207, %208 : vector<16x32xf32>
    %210 = arith.truncf %209 : vector<16x32xf32> to vector<16x32xbf16>
    %c1 = arith.constant 1 : index
    %c0_65 = arith.constant 0 : index
    %c0_66 = arith.constant 0 : index
    %211 = vector.load %arg3[%c1, %c0_65, %c0_66] : memref<2x32x96xbf16, #tpu.memory_space<vmem>>, vector<1x32x96xbf16>
    %212 = vector.shape_cast %211 : vector<1x32x96xbf16> to vector<32x96xbf16>
    %cst_67 = arith.constant dense<0.000000e+00> : vector<16x96xf32>
    %213 = tpu.matmul %210, %212, %cst_67 {dimension_numbers = #tpu.dot_dimension_numbers<[1], [0], [0], [1], [0, 0, 1, 1], [], []>} : vector<16x32xbf16>, vector<32x96xbf16>, vector<16x96xf32> -> vector<16x96xf32>
    %214 = vector.broadcast %184 : vector<1x96xf32> to vector<16x96xf32>
    %215 = arith.addf %213, %214 : vector<16x96xf32>
    %216 = vector.shape_cast %215 : vector<16x96xf32> to vector<2x8x96xf32>
    %217 = vector.extract_strided_slice %216 {offsets = [0, 0, 0], sizes = [2, 8, 16], strides = [1, 1, 1]} : vector<2x8x96xf32> to vector<2x8x16xf32>
    %218 = arith.truncf %217 : vector<2x8x16xf32> to vector<2x8x16xbf16>
    %219 = vector.extract_strided_slice %216 {offsets = [0, 0, 32], sizes = [2, 8, 16], strides = [1, 1, 1]} : vector<2x8x96xf32> to vector<2x8x16xf32>
    %220 = arith.truncf %219 : vector<2x8x16xf32> to vector<2x8x16xbf16>
    %221 = vector.extract_strided_slice %216 {offsets = [0, 0, 64], sizes = [2, 8, 16], strides = [1, 1, 1]} : vector<2x8x96xf32> to vector<2x8x16xf32>
    %222 = arith.truncf %221 : vector<2x8x16xf32> to vector<2x8x16xbf16>
    "tpu.trace_start"() <{level = 10 : i32, message = "bqd,bkd->bqk"}> : () -> ()
    %cst_68 = arith.constant dense<0.000000e+00> : vector<2x8x8xf32>
    %223 = tpu.matmul %218, %220, %cst_68 {dimension_numbers = #tpu.dot_dimension_numbers<[2], [2], [1], [1], [0, 0, 0, 1, 1, 1], [0], [0]>} : vector<2x8x16xbf16>, vector<2x8x16xbf16>, vector<2x8x8xf32> -> vector<2x8x8xf32>
    "tpu.trace_stop"() : () -> ()
    %cst_69 = arith.constant 2.500000e-01 : f32
    %224 = vector.broadcast %cst_69 : f32 to vector<2x8x8xf32>
    %225 = arith.mulf %223, %224 : vector<2x8x8xf32>
    %226 = vector.broadcast %18 : vector<1x8x8xf32> to vector<2x8x8xf32>
    %227 = arith.addf %225, %226 : vector<2x8x8xf32>
    %cst_70 = arith.constant dense<0xFF800000> : vector<2x8xf32>
    %228 = vector.multi_reduction <maximumf>, %227, %cst_70 [2] : vector<2x8x8xf32> to vector<2x8xf32>
    %229 = vector.shape_cast %228 : vector<2x8xf32> to vector<2x8x1xf32>
    %230 = vector.broadcast %229 : vector<2x8x1xf32> to vector<2x8x8xf32>
    %231 = arith.subf %227, %230 : vector<2x8x8xf32>
    %232 = math.exp %231 : vector<2x8x8xf32>
    %cst_71 = arith.constant dense<0.000000e+00> : vector<2x8xf32>
    %233 = vector.multi_reduction <add>, %232, %cst_71 [2] : vector<2x8x8xf32> to vector<2x8xf32>
    %234 = vector.shape_cast %233 : vector<2x8xf32> to vector<2x8x1xf32>
    %235 = tpu.reciprocal %234 {approx = true} : vector<2x8x1xf32> -> vector<2x8x1xf32>
    %236 = vector.broadcast %235 : vector<2x8x1xf32> to vector<2x8x8xf32>
    %237 = arith.mulf %232, %236 : vector<2x8x8xf32>
    %238 = arith.truncf %237 : vector<2x8x8xf32> to vector<2x8x8xbf16>
    "tpu.trace_start"() <{level = 10 : i32, message = "bqk,bkd->bqd"}> : () -> ()
    %cst_72 = arith.constant dense<0.000000e+00> : vector<2x8x16xf32>
    %239 = tpu.matmul %238, %222, %cst_72 {dimension_numbers = #tpu.dot_dimension_numbers<[2], [1], [1], [2], [0, 0, 0, 1, 1, 2], [0], [0]>} : vector<2x8x8xbf16>, vector<2x8x16xbf16>, vector<2x8x16xf32> -> vector<2x8x16xf32>
    "tpu.trace_stop"() : () -> ()
    %240 = vector.extract_strided_slice %216 {offsets = [0, 0, 16], sizes = [2, 8, 16], strides = [1, 1, 1]} : vector<2x8x96xf32> to vector<2x8x16xf32>
    %241 = arith.truncf %240 : vector<2x8x16xf32> to vector<2x8x16xbf16>
    %242 = vector.extract_strided_slice %216 {offsets = [0, 0, 48], sizes = [2, 8, 16], strides = [1, 1, 1]} : vector<2x8x96xf32> to vector<2x8x16xf32>
    %243 = arith.truncf %242 : vector<2x8x16xf32> to vector<2x8x16xbf16>
    %244 = vector.extract_strided_slice %216 {offsets = [0, 0, 80], sizes = [2, 8, 16], strides = [1, 1, 1]} : vector<2x8x96xf32> to vector<2x8x16xf32>
    %245 = arith.truncf %244 : vector<2x8x16xf32> to vector<2x8x16xbf16>
    "tpu.trace_start"() <{level = 10 : i32, message = "bqd,bkd->bqk"}> : () -> ()
    %cst_73 = arith.constant dense<0.000000e+00> : vector<2x8x8xf32>
    %246 = tpu.matmul %241, %243, %cst_73 {dimension_numbers = #tpu.dot_dimension_numbers<[2], [2], [1], [1], [0, 0, 0, 1, 1, 1], [0], [0]>} : vector<2x8x16xbf16>, vector<2x8x16xbf16>, vector<2x8x8xf32> -> vector<2x8x8xf32>
    "tpu.trace_stop"() : () -> ()
    %cst_74 = arith.constant 2.500000e-01 : f32
    %247 = vector.broadcast %cst_74 : f32 to vector<2x8x8xf32>
    %248 = arith.mulf %246, %247 : vector<2x8x8xf32>
    %249 = vector.broadcast %18 : vector<1x8x8xf32> to vector<2x8x8xf32>
    %250 = arith.addf %248, %249 : vector<2x8x8xf32>
    %cst_75 = arith.constant dense<0xFF800000> : vector<2x8xf32>
    %251 = vector.multi_reduction <maximumf>, %250, %cst_75 [2] : vector<2x8x8xf32> to vector<2x8xf32>
    %252 = vector.shape_cast %251 : vector<2x8xf32> to vector<2x8x1xf32>
    %253 = vector.broadcast %252 : vector<2x8x1xf32> to vector<2x8x8xf32>
    %254 = arith.subf %250, %253 : vector<2x8x8xf32>
    %255 = math.exp %254 : vector<2x8x8xf32>
    %cst_76 = arith.constant dense<0.000000e+00> : vector<2x8xf32>
    %256 = vector.multi_reduction <add>, %255, %cst_76 [2] : vector<2x8x8xf32> to vector<2x8xf32>
    %257 = vector.shape_cast %256 : vector<2x8xf32> to vector<2x8x1xf32>
    %258 = tpu.reciprocal %257 {approx = true} : vector<2x8x1xf32> -> vector<2x8x1xf32>
    %259 = vector.broadcast %258 : vector<2x8x1xf32> to vector<2x8x8xf32>
    %260 = arith.mulf %255, %259 : vector<2x8x8xf32>
    %261 = arith.truncf %260 : vector<2x8x8xf32> to vector<2x8x8xbf16>
    "tpu.trace_start"() <{level = 10 : i32, message = "bqk,bkd->bqd"}> : () -> ()
    %cst_77 = arith.constant dense<0.000000e+00> : vector<2x8x16xf32>
    %262 = tpu.matmul %261, %245, %cst_77 {dimension_numbers = #tpu.dot_dimension_numbers<[2], [1], [1], [2], [0, 0, 0, 1, 1, 2], [0], [0]>} : vector<2x8x8xbf16>, vector<2x8x16xbf16>, vector<2x8x16xf32> -> vector<2x8x16xf32>
    "tpu.trace_stop"() : () -> ()
    %263 = tpu.concatenate %239, %262 in 2 : vector<2x8x16xf32>, vector<2x8x16xf32> -> vector<2x8x32xf32>
    %264 = vector.shape_cast %263 : vector<2x8x32xf32> to vector<16x32xf32>
    %265 = arith.truncf %264 : vector<16x32xf32> to vector<16x32xbf16>
    %c1_78 = arith.constant 1 : index
    %c0_79 = arith.constant 0 : index
    %c0_80 = arith.constant 0 : index
    %266 = vector.load %arg4[%c1_78, %c0_79, %c0_80] : memref<2x32x32xbf16, #tpu.memory_space<vmem>>, vector<1x32x32xbf16>
    %267 = vector.shape_cast %266 : vector<1x32x32xbf16> to vector<32x32xbf16>
    %cst_81 = arith.constant dense<0.000000e+00> : vector<16x32xf32>
    %268 = tpu.matmul %265, %267, %cst_81 {dimension_numbers = #tpu.dot_dimension_numbers<[1], [0], [0], [1], [0, 0, 1, 1], [], []>} : vector<16x32xbf16>, vector<32x32xbf16>, vector<16x32xf32> -> vector<16x32xf32>
    %269 = vector.broadcast %185 : vector<1x32xf32> to vector<16x32xf32>
    %270 = arith.addf %268, %269 : vector<16x32xf32>
    %271 = arith.addf %181, %270 : vector<16x32xf32>
    %cst_82 = arith.constant dense<0.000000e+00> : vector<16xf32>
    %272 = vector.multi_reduction <add>, %271, %cst_82 [1] : vector<16x32xf32> to vector<16xf32>
    %273 = vector.shape_cast %272 : vector<16xf32> to vector<16x1xf32>
    %cst_83 = arith.constant 3.200000e+01 : f32
    %274 = vector.broadcast %cst_83 : f32 to vector<16x1xf32>
    %275 = arith.divf %273, %274 : vector<16x1xf32>
    %276 = vector.broadcast %275 : vector<16x1xf32> to vector<16x32xf32>
    %277 = arith.subf %271, %276 : vector<16x32xf32>
    %278 = arith.mulf %277, %277 : vector<16x32xf32>
    %cst_84 = arith.constant dense<0.000000e+00> : vector<16xf32>
    %279 = vector.multi_reduction <add>, %278, %cst_84 [1] : vector<16x32xf32> to vector<16xf32>
    %280 = vector.shape_cast %279 : vector<16xf32> to vector<16x1xf32>
    %cst_85 = arith.constant 3.200000e+01 : f32
    %281 = vector.broadcast %cst_85 : f32 to vector<16x1xf32>
    %282 = arith.divf %280, %281 : vector<16x1xf32>
    %cst_86 = arith.constant 9.99999974E-6 : f32
    %283 = vector.broadcast %cst_86 : f32 to vector<16x1xf32>
    %284 = arith.addf %282, %283 : vector<16x1xf32>
    %285 = math.rsqrt %284 : vector<16x1xf32>
    %286 = vector.broadcast %285 : vector<16x1xf32> to vector<16x32xf32>
    %287 = arith.mulf %277, %286 : vector<16x32xf32>
    %288 = vector.broadcast %186 : vector<1x32xf32> to vector<16x32xf32>
    %289 = arith.mulf %287, %288 : vector<16x32xf32>
    %290 = vector.broadcast %187 : vector<1x32xf32> to vector<16x32xf32>
    %291 = arith.addf %289, %290 : vector<16x32xf32>
    %292 = arith.truncf %291 : vector<16x32xf32> to vector<16x32xbf16>
    %c1_87 = arith.constant 1 : index
    %c0_88 = arith.constant 0 : index
    %c0_89 = arith.constant 0 : index
    %293 = vector.load %arg5[%c1_87, %c0_88, %c0_89] : memref<2x32x128xbf16, #tpu.memory_space<vmem>>, vector<1x32x128xbf16>
    %294 = vector.shape_cast %293 : vector<1x32x128xbf16> to vector<32x128xbf16>
    %cst_90 = arith.constant dense<0.000000e+00> : vector<16x128xf32>
    %295 = tpu.matmul %292, %294, %cst_90 {dimension_numbers = #tpu.dot_dimension_numbers<[1], [0], [0], [1], [0, 0, 1, 1], [], []>} : vector<16x32xbf16>, vector<32x128xbf16>, vector<16x128xf32> -> vector<16x128xf32>
    %296 = vector.broadcast %188 : vector<1x128xf32> to vector<16x128xf32>
    %297 = arith.addf %295, %296 : vector<16x128xf32>
    %cst_91 = arith.constant 5.000000e-01 : f32
    %298 = vector.broadcast %cst_91 : f32 to vector<16x128xf32>
    %299 = arith.mulf %298, %297 : vector<16x128xf32>
    %cst_92 = arith.constant 0.707106769 : f32
    %300 = vector.broadcast %cst_92 : f32 to vector<16x128xf32>
    %301 = arith.mulf %297, %300 : vector<16x128xf32>
    %302 = math.absf %301 : vector<16x128xf32>
    %cst_93 = arith.constant 0.327591091 : f32
    %303 = vector.broadcast %cst_93 : f32 to vector<16x128xf32>
    %304 = arith.mulf %303, %302 : vector<16x128xf32>
    %cst_94 = arith.constant 1.000000e+00 : f32
    %305 = vector.broadcast %cst_94 : f32 to vector<16x128xf32>
    %306 = arith.addf %305, %304 : vector<16x128xf32>
    %cst_95 = arith.constant 1.000000e+00 : f32
    %307 = vector.broadcast %cst_95 : f32 to vector<16x128xf32>
    %308 = arith.divf %307, %306 : vector<16x128xf32>
    %cst_96 = arith.constant 1.06140542 : f32
    %309 = vector.broadcast %cst_96 : f32 to vector<16x128xf32>
    %310 = arith.mulf %309, %308 : vector<16x128xf32>
    %cst_97 = arith.constant -1.45315206 : f32
    %311 = vector.broadcast %cst_97 : f32 to vector<16x128xf32>
    %312 = arith.addf %310, %311 : vector<16x128xf32>
    %313 = arith.mulf %312, %308 : vector<16x128xf32>
    %cst_98 = arith.constant 1.42141378 : f32
    %314 = vector.broadcast %cst_98 : f32 to vector<16x128xf32>
    %315 = arith.addf %313, %314 : vector<16x128xf32>
    %316 = arith.mulf %315, %308 : vector<16x128xf32>
    %cst_99 = arith.constant -0.284496725 : f32
    %317 = vector.broadcast %cst_99 : f32 to vector<16x128xf32>
    %318 = arith.addf %316, %317 : vector<16x128xf32>
    %319 = arith.mulf %318, %308 : vector<16x128xf32>
    %cst_100 = arith.constant 0.254829586 : f32
    %320 = vector.broadcast %cst_100 : f32 to vector<16x128xf32>
    %321 = arith.addf %319, %320 : vector<16x128xf32>
    %322 = arith.mulf %321, %308 : vector<16x128xf32>
    %cst_101 = arith.constant 0.000000e+00 : f32
    %323 = vector.broadcast %cst_101 : f32 to vector<16x128xf32>
    %324 = arith.subf %323, %302 : vector<16x128xf32>
    %325 = arith.mulf %324, %302 : vector<16x128xf32>
    %326 = math.exp %325 : vector<16x128xf32>
    %327 = arith.mulf %322, %326 : vector<16x128xf32>
    %cst_102 = arith.constant 1.000000e+00 : f32
    %328 = vector.broadcast %cst_102 : f32 to vector<16x128xf32>
    %329 = arith.subf %328, %327 : vector<16x128xf32>
    %cst_103 = arith.constant 0.000000e+00 : f32
    %330 = vector.broadcast %cst_103 : f32 to vector<16x128xf32>
    %331 = arith.cmpf oge, %301, %330 : vector<16x128xf32>
    %cst_104 = arith.constant 0.000000e+00 : f32
    %332 = vector.broadcast %cst_104 : f32 to vector<16x128xf32>
    %333 = arith.subf %332, %329 : vector<16x128xf32>
    %334 = arith.select %331, %329, %333 : vector<16x128xi1>, vector<16x128xf32>
    %cst_105 = arith.constant 1.000000e+00 : f32
    %335 = vector.broadcast %cst_105 : f32 to vector<16x128xf32>
    %336 = arith.addf %335, %334 : vector<16x128xf32>
    %337 = arith.mulf %299, %336 : vector<16x128xf32>
    %338 = arith.truncf %337 : vector<16x128xf32> to vector<16x128xbf16>
    %c1_106 = arith.constant 1 : index
    %c0_107 = arith.constant 0 : index
    %c0_108 = arith.constant 0 : index
    %339 = vector.load %arg6[%c1_106, %c0_107, %c0_108] : memref<2x128x32xbf16, #tpu.memory_space<vmem>>, vector<1x128x32xbf16>
    %340 = vector.shape_cast %339 : vector<1x128x32xbf16> to vector<128x32xbf16>
    %cst_109 = arith.constant dense<0.000000e+00> : vector<16x32xf32>
    %341 = tpu.matmul %338, %340, %cst_109 {dimension_numbers = #tpu.dot_dimension_numbers<[1], [0], [0], [1], [0, 0, 1, 1], [], []>} : vector<16x128xbf16>, vector<128x32xbf16>, vector<16x32xf32> -> vector<16x32xf32>
    %342 = vector.broadcast %189 : vector<1x32xf32> to vector<16x32xf32>
    %343 = arith.addf %341, %342 : vector<16x32xf32>
    %344 = arith.addf %271, %343 : vector<16x32xf32>
    %345 = vector.extract_strided_slice %0 {offsets = [16, 0], sizes = [1, 32], strides = [1, 1]} : vector<18x128xf32> to vector<1x32xf32>
    %346 = vector.extract_strided_slice %0 {offsets = [17, 0], sizes = [1, 32], strides = [1, 1]} : vector<18x128xf32> to vector<1x32xf32>
    %cst_110 = arith.constant dense<0.000000e+00> : vector<16xf32>
    %347 = vector.multi_reduction <add>, %344, %cst_110 [1] : vector<16x32xf32> to vector<16xf32>
    %348 = vector.shape_cast %347 : vector<16xf32> to vector<16x1xf32>
    %cst_111 = arith.constant 3.200000e+01 : f32
    %349 = vector.broadcast %cst_111 : f32 to vector<16x1xf32>
    %350 = arith.divf %348, %349 : vector<16x1xf32>
    %351 = vector.broadcast %350 : vector<16x1xf32> to vector<16x32xf32>
    %352 = arith.subf %344, %351 : vector<16x32xf32>
    %353 = arith.mulf %352, %352 : vector<16x32xf32>
    %cst_112 = arith.constant dense<0.000000e+00> : vector<16xf32>
    %354 = vector.multi_reduction <add>, %353, %cst_112 [1] : vector<16x32xf32> to vector<16xf32>
    %355 = vector.shape_cast %354 : vector<16xf32> to vector<16x1xf32>
    %cst_113 = arith.constant 3.200000e+01 : f32
    %356 = vector.broadcast %cst_113 : f32 to vector<16x1xf32>
    %357 = arith.divf %355, %356 : vector<16x1xf32>
    %cst_114 = arith.constant 9.99999974E-6 : f32
    %358 = vector.broadcast %cst_114 : f32 to vector<16x1xf32>
    %359 = arith.addf %357, %358 : vector<16x1xf32>
    %360 = math.rsqrt %359 : vector<16x1xf32>
    %361 = vector.broadcast %360 : vector<16x1xf32> to vector<16x32xf32>
    %362 = arith.mulf %352, %361 : vector<16x32xf32>
    %363 = vector.broadcast %345 : vector<1x32xf32> to vector<16x32xf32>
    %364 = arith.mulf %362, %363 : vector<16x32xf32>
    %365 = vector.broadcast %346 : vector<1x32xf32> to vector<16x32xf32>
    %366 = arith.addf %364, %365 : vector<16x32xf32>
    %367 = arith.truncf %366 : vector<16x32xf32> to vector<16x32xbf16>
    %c0_115 = arith.constant 0 : index
    %c0_116 = arith.constant 0 : index
    %368 = vector.load %arg7[%c0_115, %c0_116] : memref<32x128xbf16, #tpu.memory_space<vmem>>, vector<32x128xbf16>
    %cst_117 = arith.constant dense<0.000000e+00> : vector<16x128xf32>
    %369 = tpu.matmul %367, %368, %cst_117 {dimension_numbers = #tpu.dot_dimension_numbers<[1], [0], [0], [1], [0, 0, 1, 1], [], []>} : vector<16x32xbf16>, vector<32x128xbf16>, vector<16x128xf32> -> vector<16x128xf32>
    %c0_118 = arith.constant 0 : index
    %c0_119 = arith.constant 0 : index
    %370 = vector.load %arg9[%c0_118, %c0_119] : memref<16x128xf32, #tpu.memory_space<vmem>>, vector<16x128xf32>
    tpu.vector_store %arg9[%c0_118, %c0_119], %369 {strides = array<i32>} : memref<16x128xf32, #tpu.memory_space<vmem>>, vector<16x128xf32>,
    return
  }
}

</mosaic_0001>

<bundles_post_ra>
// kernel: _gpt_forward_impl.1
= control target key start
LH: loop header
LB: loop body
LE: loop exit
PB: predicated region body
PF: predicated region fallthrough
CT: control target
= control target key end

     0   :  { %v2625_v1 = vmov 0   ;;  %v2626_v2 = vmov 0.0   ;;  %vm2627_vm0 = vmmov 0   ;;  %s3207_s0 = inlined_call_operand.vmem [shape: s32[16,1], index: 0, kind: input, shape index: {}]   ;;  %s3208_s1 = inlined_call_operand.vmem [shape: bf16[128,32], index: 1, kind: input, shape index: {}]   ;;  %s3209_s2 = inlined_call_operand.vmem [shape: f32[16,32], index: 2, kind: input, shape index: {}]   ;;  %s3210_s3 = inlined_call_operand.vmem [shape: bf16[2,32,96], index: 3, kind: input, shape index: {}]   ;;  %s3211_s4 = inlined_call_operand.vmem [shape: bf16[2,32,32], index: 4, kind: input, shape index: {}]   ;;  %s3212_s5 = inlined_call_operand.vmem [shape: bf16[2,32,128], index: 5, kind: input, shape index: {}]   ;;  %s3213_s6 = inlined_call_operand.vmem [shape: bf16[2,128,32], index: 6, kind: input, shape index: {}]   ;;  %s3214_s7 = inlined_call_operand.vmem [shape: bf16[32,128], index: 7, kind: input, shape index: {}]   ;;  %s3215_s8 = inlined_call_operand.vmem [shape: f32[18,128], index: 8, kind: input, shape index: {}]   ;;  %s3216_s9 = inlined_call_operand.hbm [shape: f32[16,128], index: 9, kind: output, shape index: {}]  }
   0x1   :  { %v37_v0 = vld [vmem:[%s3207_s0] sm:$0xff]  ;;  %2484 = vset.pattern.permute.xlu0 %v2625_v1  ;;  %2258 = vmatprep.subr.bf16.mxu0 %v2626_v2  ;;  %v38_v4 = vld [vmem:[%s3207_s0 + $0x8] sm:$0xff]  ;;  %v2497_v6 = vld [vmem:[%s3208_s1 + $0x10] sm:$0xff]  }
   0x2   :  { %v2495_v3 = vld [vmem:[%s3208_s1] sm:$0xff]   ;;  %42 = vperm.xlu0 %2484, %v37_v0   ;;  %2278 = vmatprep.subr.bf16.mxu1 %v2626_v2  ;;  %v2496_v5 = vld [vmem:[%s3208_s1 + $0x8] sm:$0xff]   ;;  %v2498_v7 = vld [vmem:[%s3208_s1 + $0x18] sm:$0xff]  }
   0x3   :  { %2259 = vmatpush3.bf16.msra.mxu0 %v2495_v3  ;;  %2274 = vmatprep.mubr.msk.bf16.mxu0 %vm2627_vm0, %v2626_v2  ;;  %v2499_v8 = vld [vmem:[%s3208_s1 + $0x20] sm:$0xff]   ;;  %v2500_v9 = vld [vmem:[%s3208_s1 + $0x28] sm:$0xff]   ;;  %v2501_v10 = vld [vmem:[%s3208_s1 + $0x30] sm:$0xff]  }
   0x4   :  { %2260 = vmatprep.subr.bf16.mxu0 %v2626_v2  ;;  %2282 = vmatprep.mubr.msk.bf16.mxu1 %vm2627_vm0, %v2626_v2  ;;  %v2502_v11 = vld [vmem:[%s3208_s1 + $0x38] sm:$0xff]  }
   0x6   :  { %45 = vperm.xlu0 %2484, %v38_v4  }
   0x7   :  { %2261 = vmatpush3.bf16.msra.mxu0 %v2496_v5 }
   0x8   :  { %2262 = vmatprep.subr.bf16.mxu0 %v2626_v2 }
   0xb   :  { %2263 = vmatpush3.bf16.msra.mxu0 %v2497_v6 }
   0xc   :  { %2264 = vmatprep.subr.bf16.mxu0 %v2626_v2 }
   0xf   :  { %2265 = vmatpush3.bf16.msra.mxu0 %v2498_v7 }
  0x10   :  { %2266 = vmatprep.subr.bf16.mxu0 %v2626_v2 }
  0x13   :  { %2267 = vmatpush3.bf16.msra.mxu0 %v2499_v8 }
  0x14   :  { %2268 = vmatprep.subr.bf16.mxu0 %v2626_v2 }
  0x17   :  { %2269 = vmatpush3.bf16.msra.mxu0 %v2500_v9 }
  0x18   :  { %2270 = vmatprep.subr.bf16.mxu0 %v2626_v2 }
  0x1b   :  { %2271 = vmatpush3.bf16.msra.mxu0 %v2501_v10 }
  0x1c   :  { %2272 = vmatprep.subr.bf16.mxu0 %v2626_v2 }
  0x1d   :  { %14 = vsyncpa [#allocation3], 0  ;;  %v39_v12 = vlaneseq  ;;  %v2628_v16 = vmov 1.0|1.0   ;;  %v70_v17 = vld [vmem:[%s3209_s2] sm:$0xff]  ;;  %v71_v19 = vld [vmem:[%s3209_s2 + $0x8] sm:$0xff] }
  0x1e   :  { %vm165_vm4 = vcmask 261120   ;;  %v2503_v37 = vld [vmem:[%s3210_s3] sm:$0xff]   ;;  %v2504_v38 = vld [vmem:[%s3210_s3 + $0x8] sm:$0xff]   ;;  %s2629_s15 = smov 96   ;;  %vm275_vm5 = vcmask 130048   ;;  %vm375_vm7 = vcmask 64512  }
  0x1f   :  { %2273 = vmatpush3.bf16.msra.mxu0 %v2502_v11  ;;  %v2733_v14 = vand.u32 127, %v39_v12  ;;  %2279 = vmatpush3.bf16.msra.mxu1 %v2503_v37  ;;  %v2765_v45 = vshrl.u32 %v39_v12, 7  ;;  %v2773_v47 = vld [vmem:[%s3215_s8] sm:$0xff]  ;;  %v2630_v11 = vmov -1e+30   ;;  %s2631_s16 = smov 64  }
  0x20   :  { %2316 = vmatprep.subr.bf16.mxu0 %v2626_v2  ;;  %2280 = vmatprep.subr.bf16.mxu1 %v2626_v2  ;;  %vm405_vm8 = vcmask 1043456   ;;  %s2632_s17 = smov 80   ;;  %s2633_s18 = smov 112  }
  0x21   :  { %v2768_v46 = vsub.s32 0, %v2765_v45  ;;  %v2778_v51 = vsub.s32 1, %v2765_v45  ;;  %v212_v60 = vsub.s32 2, %v2765_v45  ;;  %vm163_vm6 = vcmp.ge.s32.totalorder %v2765_v45, %v2733_v14  ;;  %s2634_s0 = smov 48   ;;  %s2635_s23 = smov 16  }
  0x22   :  { %v2811_v12 = vsel %vm163_vm6, 0.0, %v2630_v11 }
  0x23   :  { %2281 = vmatpush3.bf16.msra.mxu1 %v2504_v38  ;;  %v196_v50 = vrot.slane %v2773_v47, %v2768_v46  ;;  %v202_v55 = vrot.slane %v2773_v47, %v2778_v51  ;;  %v213_v61 = vrot.slane %v2773_v47, %v212_v60 }
  0x24   :  { %2286 = vmatprep.subr.bf16.mxu1 %v2626_v2 }
  0x81   :  { %v43_v13 = vpop.permute.xlu0 %42 }
  0x82   :  { %vm47_vm1 = vcmp.eq.s32.totalorder %v43_v13, %v2733_v14 }
  0x85   :  { %v46_v15 = vpop.permute.xlu0 %45 }
  0x86   :  { %vm48_vm2 = vcmp.eq.s32.totalorder %v46_v15, %v2733_v14 }
  0x87   :  { %vm2095_vm3 = vmpackc.low %vm48_vm2, %vm47_vm1 }
  0x88   :  { %2275 = vmatmul.mubr.msk.bf16.vlgmr.msra.gmra.mrb[0].mxu0 %vm2095_vm3, %v2628_v16 }
  0x89   :  { %2318 = vmatprep.mubr.msk.bf16.mxu0 %vm2627_vm0, %v2626_v2 }
 0x15b   :  { %v154_v18 = vpop.f32.mrb[0].mxu0 }
 0x15c   :  { %v2745_v20 = vadd.f32 %v154_v18, %v70_v17  ;;  %v2276_v21 = vpop.f32.mrb[1].mxu0 }
 0x15d   :  { %v157_v22 = vpop.f32.mrb[2].mxu0 }
 0x15e   :  { %v2747_v23 = vadd.f32 %v157_v22, %v71_v19  ;;  %v2277_v24 = vpop.f32.mrb[3].mxu0  ;;  %v166_v25 = vsel %vm165_vm4, %v2745_v20, 0.0 }
 0x15f   :  { %167 = vadd.xlane.f32.xlu1 %v166_v25 }
 0x160   :  { %v169_v26 = vsel %vm165_vm4, %v2747_v23, 0.0 }
 0x163   :  { %170 = vadd.xlane.f32.xlu1 %v169_v26 }
 0x1ec   :  { %v168_v27 = vpop.xlane.xlu1 %167 }
 0x1ed   :  { %v173_v28 = vmul.f32 0.03125, %v168_v27 }
 0x1ef   :  { %v175_v29 = vsub.f32 %v2745_v20, %v173_v28 }
 0x1f0   :  { %v171_v30 = vpop.xlane.xlu1 %170 }
 0x1f1   :  { %v174_v31 = vmul.f32 0.03125, %v171_v30  ;;  %v177_v32 = vmul.f32 %v175_v29, %v175_v29 }
 0x1f3   :  { %v176_v33 = vsub.f32 %v2747_v23, %v174_v31  ;;  %v179_v34 = vsel %vm165_vm4, %v177_v32, 0.0 }
 0x1f4   :  { %180 = vadd.xlane.f32.xlu0 %v179_v34 }
 0x1f5   :  { %v178_v35 = vmul.f32 %v176_v33, %v176_v33 }
 0x1f7   :  { %v182_v36 = vsel %vm165_vm4, %v178_v35, 0.0 }
 0x1f8   :  { %183 = vadd.xlane.f32.xlu1 %v182_v36 }
 0x281   :  { %v181_v39 = vpop.xlane.xlu0 %180 }
 0x282   :  { %v185_v40 = vmul.f32 0.03125, %v181_v39 }
 0x284   :  { %v187_v41 = vadd.f32 1e-05, %v185_v40 }
 0x285   :  { %v184_v42 = vpop.xlane.xlu1 %183 }
 0x286   :  { %2533 = vrsqrt.f32 %v187_v41  ;;  %v186_v43 = vmul.f32 0.03125, %v184_v42 }
 0x288   :  { %v188_v44 = vadd.f32 1e-05, %v186_v43 }
 0x28a   :  { %2535 = vrsqrt.f32 %v188_v44 }
 0x290   :  { %v2534_v48 = vpop.eup %2533 }
 0x291   :  { %v191_v49 = vmul.f32 %v2534_v48, %v175_v29 }
 0x293   :  { %v197_v54 = vmul.f32 %v196_v50, %v191_v49 }
 0x294   :  { %v2536_v52 = vpop.eup %2535 }
 0x295   :  { %v192_v53 = vmul.f32 %v2536_v52, %v176_v33  ;;  %v203_v57 = vadd.f32 %v202_v55, %v197_v54 }
 0x297   :  { %v198_v56 = vmul.f32 %v196_v50, %v192_v53 }
 0x299   :  { %v204_v58 = vadd.f32 %v202_v55, %v198_v56 }
 0x29b   :  { %v205_v59 = vpack.c.bf16 %v204_v58, %v203_v57 }
 0x29d   :  { %2283 = vmatmul.mubr.msk.bf16.vlgmr.msra.gmra.mrb[0].mxu1 %vm165_vm4, %v205_v59 }
 0x29e   :  { %2288 = vmatprep.mubr.msk.bf16.mxu1 %vm2627_vm0, %v2626_v2 }
 0x370   :  { %v263_v62 = vpop.f32.mrb[0].mxu1 }
 0x371   :  { %v264_v63 = vadd.f32 %v263_v62, %v213_v61  ;;  %v2284_v0 = vpop.f32.mrb[1].mxu1 }
 0x372   :  { %v266_v1 = vpop.f32.mrb[2].mxu1 }
 0x373   :  { %v2789_v3 = vpack.c.bf16 %v264_v63, %v264_v63  ;;  %v267_v4 = vadd.f32 %v266_v1, %v213_v61  ;;  %v2285_v5 = vpop.f32.mrb[3].mxu1 }
 0x375   :  { %273 = vrot.lane.b32.xlu1 %v2789_v3, %s2629_s15  ;;  %v2793_v6 = vpack.c.bf16 %v267_v4, %v267_v4 }
 0x379   :  { %323 = vrot.lane.b32.xlu1 %v2793_v6, %s2629_s15 }
 0x3e7   :  { %v274_v7 = vpop.permute.xlu1 %273 }
 0x3e8   :  { %v280_v8 = vsel %vm275_vm5, %v274_v7, 0 }
 0x3e9   :  { %2287 = vmatpush3.bf16.xpose.msra.mxu1 %v280_v8 }
 0x3ea   :  { %2292 = vmatprep.subr.bf16.mxu1 %v2626_v2 }
 0x3eb   :  { %v324_v9 = vpop.permute.xlu1 %323 }
 0x3ec   :  { %v329_v10 = vsel %vm275_vm5, %v324_v9, 0 }
 0x3f0   :  { %2289 = vmatmul.mubr.msk.bf16.vlgmr.msra.gmra.mrb[4].mxu1 %vm275_vm5, %v2789_v3 }
 0x3f1   :  { %2293 = vmatpush3.bf16.xpose.msra.mxu1 %v329_v10  ;;  %2294 = vmatprep.mubr.msk.bf16.mxu1 %vm2627_vm0, %v2626_v2 }
 0x3f2   :  { %2298 = vmatprep.subr.bf16.mxu1 %v2626_v2 }
 0x3f8   :  { %2295 = vmatmul.mubr.msk.bf16.vlgmr.msra.gmra.mrb[8].mxu1 %vm275_vm5, %v2793_v6 }
 0x3f9   :  { %2300 = vmatprep.mubr.msk.bf16.mxu1 %vm2627_vm0, %v2626_v2 }
 0x4c3   :  { %v316_v13 = vpop.f32.mrb[4].mxu1 }
 0x4c4   :  { %v371_v15 = vmul.f32 0.25, %v316_v13  ;;  %v2290_v16 = vpop.f32.mrb[5].mxu1 }
 0x4c5   :  { %v319_v17 = vpop.f32.mrb[6].mxu1 }
 0x4c6   :  { %v2291_v18 = vpop.f32.mrb[7].mxu1  ;;  %v373_v19 = vadd.f32 %v371_v15, %v2811_v12 }
 0x4c8   :  { %v376_v21 = vsel %vm375_vm7, %v373_v19, -inf }
 0x4c9   :  { %377 = vmax.xlane.f32.xlu1 %v376_v21 }
 0x4cb   :  { %v365_v22 = vpop.f32.mrb[8].mxu1 }
 0x4cc   :  { %v372_v24 = vmul.f32 0.25, %v365_v22  ;;  %v2296_v25 = vpop.f32.mrb[9].mxu1 }
 0x4cd   :  { %v368_v26 = vpop.f32.mrb[10].mxu1 }
 0x4ce   :  { %v2297_v27 = vpop.f32.mrb[11].mxu1  ;;  %v374_v14 = vadd.f32 %v372_v24, %v2811_v12 }
 0x4d0   :  { %v379_v28 = vsel %vm375_vm7, %v374_v14, -inf }
 0x4d1   :  { %380 = vmax.xlane.f32.xlu0 %v379_v28 }
 0x4da   :  { %449 = vrot.lane.b32.xlu1 %v2793_v6, %s2631_s16 }
 0x4e7   :  { %400 = vrot.lane.b32.xlu0 %v2789_v3, %s2631_s16 }
 0x556   :  { %v378_v29 = vpop.xlane.xlu1 %377 }
 0x557   :  { %v382_v30 = vsub.f32 %v373_v19, %v378_v29 }
 0x559   :  { %v384_v31 = vmul.f32 1.442695, %v382_v30 }
 0x55a   :  { %v450_v44 = vpop.permute.xlu1 %449 }
 0x55b   :  { %2537 = vpow2.f32 %v384_v31  ;;  %v455_v49 = vsel %vm405_vm8, %v450_v44, 0 }
 0x55e   :  { %v381_v32 = vpop.xlane.xlu0 %380 }
 0x55f   :  { %v383_v37 = vsub.f32 %v374_v14, %v381_v32 }
 0x561   :  { %v386_v38 = vmul.f32 1.442695, %v383_v37 }
 0x562   :  { %v401_v33 = vpop.permute.xlu0 %400 }
 0x563   :  { %v407_v34 = vsel %vm405_vm8, %v401_v33, 0  ;;  %2539 = vpow2.f32 %v386_v38 }
 0x564   :  { %2299 = vmatpush3.bf16.msra.mxu1 %v407_v34 }
 0x565   :  { %v2538_v35 = vpop.eup %2537  ;;  %2304 = vmatprep.subr.bf16.mxu1 %v2626_v2 }
 0x566   :  { %v388_v36 = vsel %vm375_vm7, %v2538_v35, 0.0 }
 0x567   :  { %389 = vadd.xlane.f32.xlu0 %v388_v36 }
 0x56d   :  { %v2540_v39 = vpop.eup %2539 }
 0x56e   :  { %v391_v40 = vsel %vm375_vm7, %v2540_v39, 0.0 }
 0x57d   :  { %499 = vrot.lane.b32.xlu0 %v2789_v3, %s2632_s17 }
 0x59c   :  { %392 = vadd.xlane.f32.xlu0 %v391_v40 }
 0x5b2   :  { %549 = vrot.lane.b32.xlu0 %v2793_v6, %s2632_s17 }
 0x5b6   :  { %497 = vrot.lane.b32.xlu0 %v2789_v3, %s2633_s18 }
 0x5ba   :  { %547 = vrot.lane.b32.xlu0 %v2793_v6, %s2633_s18 }
 0x5f4   :  { %v390_v41 = vpop.xlane.xlu0 %389 }
 0x5f5   :  { %2541 = vrcp.f32 %v390_v41 }
 0x5f8   :  { %v500_v50 = vpop.permute.xlu0 %499 }
 0x5f9   :  { %v505_v61 = vsel %vm275_vm5, %v500_v50, 0 }
 0x5ff   :  { %v2542_v42 = vpop.eup %2541 }
 0x600   :  { %v396_v43 = vmul.f32 %v2542_v42, %v2538_v35 }
 0x602   :  { %v398_v48 = vpack.c.bf16 %v396_v43, %v396_v43 }
 0x604   :  { %2301 = vmatmul.mubr.msk.bf16.vlgmr.msra.gmra.mrb[12].mxu1 %vm375_vm7, %v398_v48 }
 0x605   :  { %2305 = vmatpush3.bf16.msra.mxu1 %v455_v49  ;;  %2306 = vmatprep.mubr.msk.bf16.mxu1 %vm2627_vm0, %v2626_v2  ;;  %v2505_v49 = vld [vmem:[%s3211_s4] sm:$0xff]  }
 0x606   :  { %2310 = vmatprep.subr.bf16.mxu1 %v2626_v2 }
 0x629   :  { %v393_v52 = vpop.xlane.xlu0 %392 }
 0x62a   :  { %2543 = vrcp.f32 %v393_v52 }
 0x62d   :  { %v550_v53 = vpop.permute.xlu0 %549 }
 0x62e   :  { %v555_v54 = vsel %vm275_vm5, %v550_v53, 0 }
 0x62f   :  { %2317 = vmatpush3.bf16.xpose.msra.mxu0 %v555_v54  ;;  %v2506_v54 = vld [vmem:[%s3211_s4 + $0x8] sm:$0xff]  }
 0x630   :  { %2328 = vmatprep.subr.bf16.mxu0 %v2626_v2 }
 0x631   :  { %v498_v55 = vpop.permute.xlu0 %497 }
 0x634   :  { %v2544_v56 = vpop.eup %2543 }
 0x635   :  { %v397_v57 = vmul.f32 %v2544_v56, %v2540_v39  ;;  %v548_v58 = vpop.permute.xlu0 %547 }
 0x636   :  { %2319 = vmatmul.mubr.msk.bf16.vlgmr.msra.gmra.mrb[4].mxu0 %vm275_vm5, %v548_v58 }
 0x637   :  { %v399_v59 = vpack.c.bf16 %v397_v57, %v397_v57  ;;  %2330 = vmatprep.mubr.msk.bf16.mxu0 %vm2627_vm0, %v2626_v2 }
 0x639   :  { %2307 = vmatmul.mubr.msk.bf16.vlgmr.msra.gmra.mrb[16].mxu1 %vm375_vm7, %v399_v59 }
 0x63a   :  { %2311 = vmatpush3.bf16.xpose.msra.mxu1 %v505_v61  ;;  %2312 = vmatprep.mubr.msk.bf16.mxu1 %vm2627_vm0, %v2626_v2 }
 0x63b   :  { %2322 = vmatprep.subr.bf16.mxu1 %v2626_v2 }
 0x641   :  { %2313 = vmatmul.mubr.msk.bf16.vlgmr.msra.gmra.mrb[20].mxu1 %vm275_vm5, %v498_v55 }
 0x642   :  { %2324 = vmatprep.mubr.msk.bf16.mxu1 %vm2627_vm0, %v2626_v2 }
 0x6d7   :  { %v2851_v62 = vpop.f32.mrb[12].mxu1 }
 0x6d8   :  { %v2302_v63 = vpop.f32.mrb[13].mxu1 }
 0x6d9   :  { %v446_v0 = vpop.f32.mrb[14].mxu1 }
 0x6da   :  { %v2303_v1 = vpop.f32.mrb[15].mxu1 }
 0x709   :  { %v591_v4 = vpop.f32.mrb[4].mxu0 }
 0x70a   :  { %v598_v5 = vmul.f32 0.25, %v591_v4  ;;  %v2320_v7 = vpop.f32.mrb[5].mxu0 }
 0x70b   :  { %v594_v8 = vpop.f32.mrb[6].mxu0 }
 0x70c   :  { %v2853_v9 = vpop.f32.mrb[16].mxu1  ;;  %v2321_v10 = vpop.f32.mrb[7].mxu0  ;;  %v600_v11 = vadd.f32 %v598_v5, %v2811_v12  ;;  %v738_v8 = vsub.s32 3, %v2765_v45 }
 0x70d   :  { %v2308_v13 = vpop.f32.mrb[17].mxu1 }
 0x70e   :  { %v494_v15 = vpop.f32.mrb[18].mxu1  ;;  %v604_v16 = vsel %vm375_vm7, %v600_v11, -inf  ;;  %v739_v10 = vrot.slane %v2773_v47, %v738_v8 }
 0x70f   :  { %605 = vmax.xlane.f32.xlu0 %v604_v16  ;;  %v2309_v17 = vpop.f32.mrb[19].mxu1 }
 0x714   :  { %v541_v18 = vpop.f32.mrb[20].mxu1 }
 0x715   :  { %v597_v19 = vmul.f32 0.25, %v541_v18  ;;  %v2314_v21 = vpop.f32.mrb[21].mxu1 }
 0x716   :  { %v544_v22 = vpop.f32.mrb[22].mxu1 }
 0x717   :  { %v2315_v24 = vpop.f32.mrb[23].mxu1  ;;  %v599_v25 = vadd.f32 %v597_v19, %v2811_v12 }
 0x719   :  { %v601_v26 = vsel %vm375_vm7, %v599_v25, -inf }
 0x71a   :  { %602 = vmax.xlane.f32.xlu1 %v601_v26 }
 0x79c   :  { %v606_v27 = vpop.xlane.xlu0 %605 }
 0x79d   :  { %v608_v14 = vsub.f32 %v600_v11, %v606_v27 }
 0x79f   :  { %v611_v28 = vmul.f32 1.442695, %v608_v14 }
 0x7a1   :  { %2545 = vpow2.f32 %v611_v28 }
 0x7a7   :  { %v603_v29 = vpop.xlane.xlu1 %602 }
 0x7a8   :  { %v607_v30 = vsub.f32 %v599_v25, %v603_v29 }
 0x7aa   :  { %v609_v31 = vmul.f32 1.442695, %v607_v30  ;;  %v2507_v30 = vld [vmem:[%s3212_s5] sm:$0xff]  }
 0x7ab   :  { %v2546_v32 = vpop.eup %2545 }
 0x7ac   :  { %2547 = vpow2.f32 %v609_v31  ;;  %v616_v33 = vsel %vm375_vm7, %v2546_v32, 0.0  ;;  %v2508_v31 = vld [vmem:[%s3212_s5 + $0x8] sm:$0xff]  }
 0x7ad   :  { %617 = vadd.xlane.f32.xlu1 %v616_v33 }
 0x7b6   :  { %v2548_v34 = vpop.eup %2547 }
 0x7b7   :  { %v613_v35 = vsel %vm375_vm7, %v2548_v34, 0.0 }
 0x7b8   :  { %614 = vadd.xlane.f32.xlu0 %v613_v35 }
 0x7be   :  { %673 = vrot.lane.b32.xlu1 %v2793_v6, %s2634_s0 }
 0x7ce   :  { %625 = vrot.lane.b32.xlu0 %v2789_v3, %s2634_s0 }
 0x83a   :  { %v618_v36 = vpop.xlane.xlu1 %617 }
 0x83b   :  { %2549 = vrcp.f32 %v618_v36 }
 0x83e   :  { %v674_v37 = vpop.permute.xlu1 %673 }
 0x83f   :  { %v679_v38 = vsel %vm405_vm8, %v674_v37, 0 }
 0x840   :  { %2329 = vmatpush3.bf16.msra.mxu0 %v679_v38  ;;  %v826_v38 = vsub.s32 4, %v2765_v45 }
 0x841   :  { %2342 = vmatprep.subr.bf16.mxu0 %v2626_v2 }
 0x845   :  { %v2550_v39 = vpop.eup %2549  ;;  %v615_v40 = vpop.xlane.xlu0 %614 }
 0x846   :  { %v622_v41 = vmul.f32 %v2550_v39, %v2546_v32  ;;  %2551 = vrcp.f32 %v615_v40  ;;  %v827_v40 = vrot.slane %v2773_v47, %v826_v38 }
 0x848   :  { %v624_v42 = vpack.c.bf16 %v622_v41, %v622_v41 }
 0x849   :  { %v626_v43 = vpop.permute.xlu0 %625 }
 0x84a   :  { %v631_v44 = vsel %vm405_vm8, %v626_v43, 0  ;;  %2331 = vmatmul.mubr.msk.bf16.vlgmr.msra.gmra.mrb[8].mxu0 %vm375_vm7, %v624_v42  ;;  %v832_v42 = vsub.s32 5, %v2765_v45 }
 0x84b   :  { %2323 = vmatpush3.bf16.msra.mxu1 %v631_v44  ;;  %2346 = vmatprep.mubr.msk.bf16.mxu0 %vm2627_vm0, %v2626_v2 }
 0x84c   :  { %2334 = vmatprep.subr.bf16.mxu1 %v2626_v2  ;;  %2343 = vmatpush3.bf16.msra.mxu0 %v2507_v30 }
 0x84d   :  { %2344 = vmatprep.subr.bf16.mxu0 %v2626_v2 }
 0x850   :  { %v2552_v3 = vpop.eup %2551  ;;  %2345 = vmatpush3.bf16.msra.mxu0 %v2508_v31 }
 0x851   :  { %v621_v6 = vmul.f32 %v2552_v3, %v2548_v34  ;;  %2370 = vmatprep.subr.bf16.mxu0 %v2626_v2 }
 0x853   :  { %v623_v48 = vpack.c.bf16 %v621_v6, %v621_v6  ;;  %v833_v6 = vrot.slane %v2773_v47, %v832_v42 }
 0x855   :  { %2325 = vmatmul.mubr.msk.bf16.vlgmr.msra.gmra.mrb[24].mxu1 %vm375_vm7, %v623_v48 }
 0x856   :  { %2338 = vmatprep.mubr.msk.bf16.mxu1 %vm2627_vm0, %v2626_v2  ;;  %2335 = vmatpush3.bf16.msra.mxu1 %v2505_v49 }
 0x857   :  { %2336 = vmatprep.subr.bf16.mxu1 %v2626_v2 }
 0x85a   :  { %2337 = vmatpush3.bf16.msra.mxu1 %v2506_v54  ;;  %v2510_v54 = vld [vmem:[%s3213_s6 + $0x8] sm:$0xff]  }
 0x85b   :  { %2350 = vmatprep.subr.bf16.mxu1 %v2626_v2 }
 0x91d   :  { %v715_v50 = vpop.f32.mrb[8].mxu0 }
 0x91e   :  { %v2332_v52 = vpop.f32.mrb[9].mxu0 }
 0x91f   :  { %v718_v53 = vpop.f32.mrb[10].mxu0 }
 0x920   :  { %v2333_v55 = vpop.f32.mrb[11].mxu0  ;;  %v2509_v53 = vld [vmem:[%s3213_s6] sm:$0xff]  }
 0x921   :  { %v2511_v55 = vld [vmem:[%s3213_s6 + $0x10] sm:$0xff]  }
 0x928   :  { %v667_v56 = vpop.f32.mrb[24].mxu1 }
 0x929   :  { %v2485_v57 = vpack.i.bf16 %v715_v50, %v667_v56  ;;  %v2326_v58 = vpop.f32.mrb[25].mxu1  ;;  %v2512_v56 = vld [vmem:[%s3213_s6 + $0x18] sm:$0xff]  }
 0x92a   :  { %v670_v59 = vpop.f32.mrb[26].mxu1  ;;  %v2514_v58 = vld [vmem:[%s3213_s6 + $0x28] sm:$0xff]  }
 0x92b   :  { %2486 = vrot.lane.b32.xlu1 %v2485_v57, %s2635_s23  ;;  %v2327_v61 = vpop.f32.mrb[27].mxu1  ;;  %v2513_v57 = vld [vmem:[%s3213_s6 + $0x20] sm:$0xff]   ;;  %v2515_v59 = vld [vmem:[%s3213_s6 + $0x30] sm:$0xff]  }
 0x92c   :  { %v2516_v61 = vld [vmem:[%s3213_s6 + $0x38] sm:$0xff]  }
 0x99d   :  { %v2487_v63 = vpop.permute.xlu1 %2486 }
 0x99e   :  { %v2489_v0 = vunpack.i.h.bf16 %v2487_v63  ;;  %v2488_v1 = vunpack.i.l.bf16 %v2487_v63  ;;  %v843_v63 = vsub.s32 6, %v2765_v45 }
 0x9a0   :  { %v730_v4 = vsel %vm275_vm5, %v2853_v9, %v2489_v0  ;;  %v729_v5 = vsel %vm275_vm5, %v2851_v62, %v2488_v1  ;;  %v844_v0 = vrot.slane %v2773_v47, %v843_v63 }
 0x9a1   :  { %v731_v7 = vpack.c.bf16 %v730_v4, %v729_v5 }
 0x9a3   :  { %2339 = vmatmul.mubr.msk.bf16.vlgmr.msra.gmra.mrb[28].mxu1 %vm165_vm4, %v731_v7 }
 0x9a4   :  { %2366 = vmatprep.mubr.msk.bf16.mxu1 %vm2627_vm0, %v2626_v2  ;;  %2351 = vmatpush3.bf16.msra.mxu1 %v2509_v53 }
 0x9a5   :  { %2352 = vmatprep.subr.bf16.mxu1 %v2626_v2 }
 0x9a8   :  { %2353 = vmatpush3.bf16.msra.mxu1 %v2510_v54 }
 0x9a9   :  { %2354 = vmatprep.subr.bf16.mxu1 %v2626_v2 }
 0x9ac   :  { %2355 = vmatpush3.bf16.msra.mxu1 %v2511_v55 }
 0x9ad   :  { %2356 = vmatprep.subr.bf16.mxu1 %v2626_v2 }
 0x9b0   :  { %2357 = vmatpush3.bf16.msra.mxu1 %v2512_v56 }
 0x9b1   :  { %2358 = vmatprep.subr.bf16.mxu1 %v2626_v2 }
 0x9b4   :  { %2359 = vmatpush3.bf16.msra.mxu1 %v2513_v57 }
 0x9b5   :  { %2360 = vmatprep.subr.bf16.mxu1 %v2626_v2 }
 0x9b8   :  { %2361 = vmatpush3.bf16.msra.mxu1 %v2514_v58 }
 0x9b9   :  { %2362 = vmatprep.subr.bf16.mxu1 %v2626_v2 }
 0x9bc   :  { %2363 = vmatpush3.bf16.msra.mxu1 %v2515_v59 }
 0x9bd   :  { %2364 = vmatprep.subr.bf16.mxu1 %v2626_v2 }
 0x9c0   :  { %2365 = vmatpush3.bf16.msra.mxu1 %v2516_v61 }
 0x9c1   :  { %2396 = vmatprep.subr.bf16.mxu1 %v2626_v2 }
 0xa76   :  { %v789_v11 = vpop.f32.mrb[28].mxu1 }
 0xa77   :  { %v790_v13 = vadd.f32 %v789_v11, %v739_v10  ;;  %v2340_v15 = vpop.f32.mrb[29].mxu1 }
 0xa78   :  { %v792_v16 = vpop.f32.mrb[30].mxu1 }
 0xa79   :  { %v2896_v9 = vadd.f32 %v790_v13, %v2745_v20  ;;  %v793_v62 = vadd.f32 %v792_v16, %v739_v10  ;;  %v2341_v17 = vpop.f32.mrb[31].mxu1 }
 0xa7b   :  { %v2899_v18 = vadd.f32 %v793_v62, %v2747_v23  ;;  %v798_v19 = vsel %vm165_vm4, %v2896_v9, 0.0 }
 0xa7c   :  { %799 = vadd.xlane.f32.xlu0 %v798_v19 }
 0xa7d   :  { %v801_v21 = vsel %vm165_vm4, %v2899_v18, 0.0 }
 0xa7e   :  { %802 = vadd.xlane.f32.xlu1 %v801_v21 }
 0xb09   :  { %v800_v22 = vpop.xlane.xlu0 %799 }
 0xb0a   :  { %v804_v24 = vmul.f32 0.03125, %v800_v22 }
 0xb0b   :  { %v803_v25 = vpop.xlane.xlu1 %802 }
 0xb0c   :  { %v806_v26 = vsub.f32 %v2896_v9, %v804_v24  ;;  %v805_v20 = vmul.f32 0.03125, %v803_v25 }
 0xb0e   :  { %v807_v27 = vsub.f32 %v2899_v18, %v805_v20  ;;  %v808_v14 = vmul.f32 %v806_v26, %v806_v26 }
 0xb10   :  { %v810_v23 = vsel %vm165_vm4, %v808_v14, 0.0  ;;  %v809_v28 = vmul.f32 %v807_v27, %v807_v27 }
 0xb11   :  { %811 = vadd.xlane.f32.xlu0 %v810_v23 }
 0xb12   :  { %v813_v29 = vsel %vm165_vm4, %v809_v28, 0.0 }
 0xb15   :  { %814 = vadd.xlane.f32.xlu0 %v813_v29 }
 0xb9e   :  { %v812_v32 = vpop.xlane.xlu0 %811 }
 0xb9f   :  { %v816_v33 = vmul.f32 0.03125, %v812_v32 }
 0xba1   :  { %v818_v34 = vadd.f32 1e-05, %v816_v33 }
 0xba2   :  { %v815_v35 = vpop.xlane.xlu0 %814 }
 0xba3   :  { %2553 = vrsqrt.f32 %v818_v34  ;;  %v817_v36 = vmul.f32 0.03125, %v815_v35 }
 0xba5   :  { %v819_v37 = vadd.f32 1e-05, %v817_v36 }
 0xba7   :  { %2555 = vrsqrt.f32 %v819_v37 }
 0xbad   :  { %v2554_v39 = vpop.eup %2553 }
 0xbae   :  { %v822_v41 = vmul.f32 %v2554_v39, %v806_v26 }
 0xbb0   :  { %v828_v44 = vmul.f32 %v827_v40, %v822_v41 }
 0xbb1   :  { %v2556_v43 = vpop.eup %2555 }
 0xbb2   :  { %v823_v3 = vmul.f32 %v2556_v43, %v807_v27  ;;  %v834_v49 = vadd.f32 %v833_v6, %v828_v44 }
 0xbb4   :  { %v829_v48 = vmul.f32 %v827_v40, %v823_v3 }
 0xbb6   :  { %v835_v50 = vadd.f32 %v833_v6, %v829_v48 }
 0xbb8   :  { %v836_v52 = vpack.c.bf16 %v835_v50, %v834_v49 }
 0xbba   :  { %2347 = vmatmul.mubr.msk.bf16.vlgmr.msra.gmra.mrb[12].mxu0 %vm165_vm4, %v836_v52 }
 0xbbb   :  { %2374 = vmatprep.mubr.msk.bf16.mxu0 %vm2627_vm0, %v2626_v2 }
 0xc8d   :  { %v894_v1 = vpop.f32.mrb[12].mxu0 }
 0xc8e   :  { %v895_v4 = vadd.f32 %v894_v1, %v844_v0  ;;  %v2348_v5 = vpop.f32.mrb[13].mxu0 }
 0xc8f   :  { %v897_v7 = vpop.f32.mrb[14].mxu0 }
 0xc90   :  { %v903_v10 = vmul.f32 0.70710677, %v895_v4  ;;  %v898_v11 = vadd.f32 %v897_v7, %v844_v0  ;;  %v2349_v13 = vpop.f32.mrb[15].mxu0  ;;  %v901_v1 = vmul.f32 0.5, %v895_v4 }
 0xc92   :  { %v905_v15 = vand.u32 2147483647, %v903_v10  ;;  %v904_v16 = vmul.f32 0.70710677, %v898_v11  ;;  %vm945_vm9 = vcmp.ge.f32.partialorder %v903_v10, 0.0  ;;  %v902_v5 = vmul.f32 0.5, %v898_v11 }
 0xc94   :  { %v907_v62 = vmul.f32 0.3275911, %v905_v15  ;;  %v906_v17 = vand.u32 2147483647, %v904_v16  ;;  %v933_v24 = vsub.f32 0.0, %v905_v15  ;;  %vm946_vm10 = vcmp.ge.f32.partialorder %v904_v16, 0.0 }
 0xc96   :  { %v909_v19 = vadd.f32 1.0, %v907_v62  ;;  %v908_v21 = vmul.f32 0.3275911, %v906_v17  ;;  %v934_v25 = vsub.f32 0.0, %v906_v17  ;;  %v935_v20 = vmul.f32 %v933_v24, %v905_v15 }
 0xc98   :  { %2557 = vrcp.f32 %v909_v19  ;;  %v910_v22 = vadd.f32 1.0, %v908_v21  ;;  %v936_v28 = vmul.f32 %v934_v25, %v906_v17  ;;  %v937_v29 = vmul.f32 1.442695, %v935_v20 }
 0xc99   :  { %v974_v17 = vsub.s32 7, %v2765_v45 }
 0xc9a   :  { %2559 = vrcp.f32 %v910_v22  ;;  %v939_v34 = vmul.f32 1.442695, %v936_v28 }
 0xc9b   :  { %2561 = vpow2.f32 %v937_v29  ;;  %v975_v10 = vrot.slane %v2773_v47, %v974_v17 }
 0xc9c   :  { %2563 = vpow2.f32 %v939_v34 }
 0xca2   :  { %v2558_v26 = vpop.eup %2557 }
 0xca3   :  { %v915_v27 = vmul.f32 1.0614054, %v2558_v26 }
 0xca4   :  { %v2560_v14 = vpop.eup %2559 }
 0xca5   :  { %v917_v23 = vadd.f32 -1.4531521, %v915_v27  ;;  %v916_v30 = vmul.f32 1.0614054, %v2560_v14  ;;  %v2562_v48 = vpop.eup %2561 }
 0xca6   :  { %v2564_v53 = vpop.eup %2563 }
 0xca7   :  { %v919_v31 = vmul.f32 %v2558_v26, %v917_v23  ;;  %v918_v32 = vadd.f32 -1.4531521, %v916_v30 }
 0xca9   :  { %v921_v33 = vadd.f32 1.4214138, %v919_v31  ;;  %v920_v35 = vmul.f32 %v2560_v14, %v918_v32  ;;  %v2517_v32 = vld [vmem:[%s3210_s3 + $0x10] sm:$0xff]  }
 0xcaa   :  { %2371 = vmatpush3.bf16.msra.mxu0 %v2517_v32 }
 0xcab   :  { %v923_v36 = vmul.f32 %v2558_v26, %v921_v33  ;;  %v922_v37 = vadd.f32 1.4214138, %v920_v35  ;;  %2372 = vmatprep.subr.bf16.mxu0 %v2626_v2  ;;  %v2518_v33 = vld [vmem:[%s3210_s3 + $0x18] sm:$0xff]  }
 0xcad   :  { %v925_v39 = vadd.f32 -0.28449672, %v923_v36  ;;  %v924_v40 = vmul.f32 %v2560_v14, %v922_v37 }
 0xcae   :  { %2373 = vmatpush3.bf16.msra.mxu0 %v2518_v33 }
 0xcaf   :  { %v927_v41 = vmul.f32 %v2558_v26, %v925_v39  ;;  %v926_v43 = vadd.f32 -0.28449672, %v924_v40  ;;  %2378 = vmatprep.subr.bf16.mxu0 %v2626_v2 }
 0xcb1   :  { %v929_v44 = vadd.f32 0.2548296, %v927_v41  ;;  %v928_v3 = vmul.f32 %v2560_v14, %v926_v43  ;;  %v2995_v41 = vld [vmem:[%s3215_s8 + $0x8] sm:$0xff] }
 0xcb2   :  { %v1096_v43 = vrot.slane %v2995_v41, %v2768_v46 }
 0xcb3   :  { %v931_v6 = vmul.f32 %v2558_v26, %v929_v44  ;;  %v930_v49 = vadd.f32 0.2548296, %v928_v3 }
 0xcb5   :  { %v941_v50 = vmul.f32 %v2562_v48, %v931_v6  ;;  %v932_v52 = vmul.f32 %v2560_v14, %v930_v49 }
 0xcb7   :  { %v943_v54 = vsub.f32 1.0, %v941_v50  ;;  %v942_v55 = vmul.f32 %v2564_v53, %v932_v52  ;;  %v1102_v50 = vrot.slane %v2995_v41, %v2778_v51 }
 0xcb9   :  { %v947_v56 = vsub.f32 0.0, %v943_v54  ;;  %v944_v57 = vsub.f32 1.0, %v942_v55 }
 0xcbb   :  { %v949_v58 = vsel %vm945_vm9, %v943_v54, %v947_v56  ;;  %v948_v59 = vsub.f32 0.0, %v944_v57  ;;  %v1114_v56 = vrot.slane %v2995_v41, %v212_v60 }
 0xcbc   :  { %v951_v61 = vadd.f32 1.0, %v949_v58 }
 0xcbd   :  { %v950_v0 = vsel %vm946_vm10, %v944_v57, %v948_v59 }
 0xcbe   :  { %v952_v7 = vadd.f32 1.0, %v950_v0  ;;  %v953_v13 = vmul.f32 %v951_v61, %v901_v1 }
 0xcc0   :  { %v954_v15 = vmul.f32 %v952_v7, %v902_v5 }
 0xcc2   :  { %v955_v62 = vpack.c.bf16 %v954_v15, %v953_v13 }
 0xcc4   :  { %2367 = vmatmul.mubr.bf16.vlgmr.msra.gmra.mrb[32].mxu1 %v955_v62 }
 0xcc5   :  { %2398 = vmatprep.mubr.msk.bf16.mxu1 %vm2627_vm0, %v2626_v2 }
 0xd97   :  { %v1058_v19 = vpop.f32.mrb[32].mxu1 }
 0xd98   :  { %v1059_v21 = vadd.f32 %v1058_v19, %v975_v10  ;;  %v2368_v16 = vpop.f32.mrb[33].mxu1 }
 0xd99   :  { %v1061_v22 = vpop.f32.mrb[34].mxu1 }
 0xd9a   :  { %v2971_v4 = vadd.f32 %v1059_v21, %v2896_v9  ;;  %v1062_v11 = vadd.f32 %v1061_v22, %v975_v10  ;;  %v2369_v24 = vpop.f32.mrb[35].mxu1 }
 0xd9c   :  { %v2974_v25 = vadd.f32 %v1062_v11, %v2899_v18  ;;  %v1067_v26 = vsel %vm165_vm4, %v2971_v4, 0.0 }
 0xd9d   :  { %1068 = vadd.xlane.f32.xlu1 %v1067_v26 }
 0xd9e   :  { %v1070_v20 = vsel %vm165_vm4, %v2974_v25, 0.0 }
 0xd9f   :  { %1071 = vadd.xlane.f32.xlu0 %v1070_v20 }
 0xe2a   :  { %v1069_v47 = vpop.xlane.xlu1 %1068 }
 0xe2b   :  { %v1073_v27 = vmul.f32 0.03125, %v1069_v47 }
 0xe2c   :  { %v1072_v14 = vpop.xlane.xlu0 %1071 }
 0xe2d   :  { %v1075_v23 = vsub.f32 %v2971_v4, %v1073_v27  ;;  %v1074_v9 = vmul.f32 0.03125, %v1072_v14 }
 0xe2f   :  { %v1076_v28 = vsub.f32 %v2974_v25, %v1074_v9  ;;  %v1077_v29 = vmul.f32 %v1075_v23, %v1075_v23 }
 0xe31   :  { %v1079_v18 = vsel %vm165_vm4, %v1077_v29, 0.0  ;;  %v1078_v30 = vmul.f32 %v1076_v28, %v1076_v28 }
 0xe32   :  { %1080 = vadd.xlane.f32.xlu1 %v1079_v18 }
 0xe33   :  { %v1082_v31 = vsel %vm165_vm4, %v1078_v30, 0.0 }
 0xe34   :  { %1083 = vadd.xlane.f32.xlu0 %v1082_v31 }
 0xebf   :  { %v1081_v34 = vpop.xlane.xlu1 %1080 }
 0xec0   :  { %v1085_v35 = vmul.f32 0.03125, %v1081_v34 }
 0xec1   :  { %v1084_v36 = vpop.xlane.xlu0 %1083 }
 0xec2   :  { %v1087_v37 = vadd.f32 1e-05, %v1085_v35  ;;  %v1086_v39 = vmul.f32 0.03125, %v1084_v36 }
 0xec4   :  { %2565 = vrsqrt.f32 %v1087_v37  ;;  %v1088_v40 = vadd.f32 1e-05, %v1086_v39 }
 0xec6   :  { %2567 = vrsqrt.f32 %v1088_v40 }
 0xece   :  { %v2566_v44 = vpop.eup %2565 }
 0xecf   :  { %v1091_v3 = vmul.f32 %v2566_v44, %v1075_v23 }
 0xed0   :  { %v2568_v6 = vpop.eup %2567 }
 0xed1   :  { %v1097_v48 = vmul.f32 %v1096_v43, %v1091_v3  ;;  %v1092_v49 = vmul.f32 %v2568_v6, %v1076_v28 }
 0xed3   :  { %v1098_v52 = vmul.f32 %v1096_v43, %v1092_v49  ;;  %v1103_v53 = vadd.f32 %v1102_v50, %v1097_v48 }
 0xed5   :  { %v1104_v54 = vadd.f32 %v1102_v50, %v1098_v52 }
 0xed7   :  { %v1105_v55 = vpack.c.bf16 %v1104_v54, %v1103_v53 }
 0xed9   :  { %2375 = vmatmul.mubr.msk.bf16.vlgmr.msra.gmra.mrb[16].mxu0 %vm165_vm4, %v1105_v55 }
 0xeda   :  { %2380 = vmatprep.mubr.msk.bf16.mxu0 %vm2627_vm0, %v2626_v2 }
 0xfac   :  { %v1164_v57 = vpop.f32.mrb[16].mxu0 }
 0xfad   :  { %v1165_v58 = vadd.f32 %v1164_v57, %v1114_v56  ;;  %v2376_v59 = vpop.f32.mrb[17].mxu0 }
 0xfae   :  { %v1167_v61 = vpop.f32.mrb[18].mxu0 }
 0xfaf   :  { %v3007_v0 = vpack.c.bf16 %v1165_v58, %v1165_v58  ;;  %v1168_v1 = vadd.f32 %v1167_v61, %v1114_v56  ;;  %v2377_v5 = vpop.f32.mrb[19].mxu0 }
 0xfb1   :  { %v3009_v7 = vpack.c.bf16 %v1168_v1, %v1168_v1  ;;  %1174 = vrot.lane.b32.xlu1 %v3007_v0, %s2629_s15 }
 0xfb3   :  { %1223 = vrot.lane.b32.xlu0 %v3009_v7, %s2629_s15 }
0x1023   :  { %v1175_v13 = vpop.permute.xlu1 %1174 }
0x1024   :  { %v1180_v15 = vsel %vm275_vm5, %v1175_v13, 0 }
0x1025   :  { %2379 = vmatpush3.bf16.xpose.msra.mxu0 %v1180_v15  ;;  %v1224_v60 = vpop.permute.xlu0 %1223 }
0x1026   :  { %2384 = vmatprep.subr.bf16.mxu0 %v2626_v2  ;;  %v1229_v62 = vsel %vm275_vm5, %v1224_v60, 0 }
0x102c   :  { %2381 = vmatmul.mubr.msk.bf16.vlgmr.msra.gmra.mrb[20].mxu0 %vm275_vm5, %v3007_v0 }
0x102d   :  { %2385 = vmatpush3.bf16.xpose.msra.mxu0 %v1229_v62  ;;  %2386 = vmatprep.mubr.msk.bf16.mxu0 %vm2627_vm0, %v2626_v2 }
0x102e   :  { %2390 = vmatprep.subr.bf16.mxu0 %v2626_v2 }
0x1034   :  { %2387 = vmatmul.mubr.msk.bf16.vlgmr.msra.gmra.mrb[24].mxu0 %vm275_vm5, %v3009_v7 }
0x1035   :  { %2392 = vmatprep.mubr.msk.bf16.mxu0 %vm2627_vm0, %v2626_v2 }
0x10ff   :  { %v1216_v10 = vpop.f32.mrb[20].mxu0 }
0x1100   :  { %v1271_v19 = vmul.f32 0.25, %v1216_v10  ;;  %v2382_v21 = vpop.f32.mrb[21].mxu0 }
0x1101   :  { %v1219_v16 = vpop.f32.mrb[22].mxu0 }
0x1102   :  { %v2383_v22 = vpop.f32.mrb[23].mxu0  ;;  %v1273_v11 = vadd.f32 %v1271_v19, %v2811_v12 }
0x1104   :  { %v1275_v24 = vsel %vm375_vm7, %v1273_v11, -inf }
0x1105   :  { %1276 = vmax.xlane.f32.xlu1 %v1275_v24 }
0x1107   :  { %v1265_v26 = vpop.f32.mrb[24].mxu0 }
0x1108   :  { %v1272_v20 = vmul.f32 0.25, %v1265_v26  ;;  %v2388_v47 = vpop.f32.mrb[25].mxu0 }
0x1109   :  { %v1268_v27 = vpop.f32.mrb[26].mxu0 }
0x110a   :  { %v2389_v14 = vpop.f32.mrb[27].mxu0  ;;  %v1274_v23 = vadd.f32 %v1272_v20, %v2811_v12 }
0x110c   :  { %v1278_v9 = vsel %vm375_vm7, %v1274_v23, -inf }
0x110d   :  { %1279 = vmax.xlane.f32.xlu0 %v1278_v9 }
0x1116   :  { %1299 = vrot.lane.b32.xlu1 %v3007_v0, %s2631_s16 }
0x1192   :  { %v1277_v28 = vpop.xlane.xlu1 %1276 }
0x1193   :  { %v1281_v29 = vsub.f32 %v1273_v11, %v1277_v28 }
0x1195   :  { %v1283_v18 = vmul.f32 1.442695, %v1281_v29 }
0x1196   :  { %v1300_v30 = vpop.permute.xlu1 %1299 }
0x1197   :  { %2569 = vpow2.f32 %v1283_v18  ;;  %v1305_v31 = vsel %vm405_vm8, %v1300_v30, 0 }
0x1198   :  { %2391 = vmatpush3.bf16.msra.mxu0 %v1305_v31 }
0x1199   :  { %2402 = vmatprep.subr.bf16.mxu0 %v2626_v2 }
0x119a   :  { %v1280_v32 = vpop.xlane.xlu0 %1279 }
0x119b   :  { %v1282_v33 = vsub.f32 %v1274_v23, %v1280_v32 }
0x119d   :  { %v1285_v34 = vmul.f32 1.442695, %v1282_v33 }
0x119f   :  { %2571 = vpow2.f32 %v1285_v34 }
0x11a1   :  { %v2570_v35 = vpop.eup %2569 }
0x11a2   :  { %v1287_v36 = vsel %vm375_vm7, %v2570_v35, 0.0 }
0x11a3   :  { %1288 = vadd.xlane.f32.xlu1 %v1287_v36 }
0x11a9   :  { %v2572_v37 = vpop.eup %2571 }
0x11aa   :  { %v1290_v39 = vsel %vm375_vm7, %v2572_v37, 0.0 }
0x11ab   :  { %1291 = vadd.xlane.f32.xlu0 %v1290_v39 }
0x11b4   :  { %1397 = vrot.lane.b32.xlu1 %v3007_v0, %s2632_s17 }
0x11b8   :  { %1447 = vrot.lane.b32.xlu1 %v3009_v7, %s2632_s17 }
0x11bc   :  { %1445 = vrot.lane.b32.xlu1 %v3009_v7, %s2633_s18 }
0x11c1   :  { %1347 = vrot.lane.b32.xlu0 %v3009_v7, %s2631_s16 }
0x11c5   :  { %1395 = vrot.lane.b32.xlu0 %v3007_v0, %s2633_s18 }
0x1230   :  { %v1289_v40 = vpop.xlane.xlu1 %1288 }
0x1231   :  { %2573 = vrcp.f32 %v1289_v40 }
0x1234   :  { %v1398_v48 = vpop.permute.xlu1 %1397 }
0x1235   :  { %v1403_v52 = vsel %vm275_vm5, %v1398_v48, 0 }
0x1238   :  { %v1292_v43 = vpop.xlane.xlu0 %1291  ;;  %v1448_v55 = vpop.permute.xlu1 %1447 }
0x1239   :  { %2575 = vrcp.f32 %v1292_v43  ;;  %v1453_v58 = vsel %vm275_vm5, %v1448_v55, 0 }
0x123b   :  { %v2574_v44 = vpop.eup %2573 }
0x123c   :  { %v1295_v3 = vmul.f32 %v2574_v44, %v2570_v35  ;;  %v1348_v6 = vpop.permute.xlu0 %1347  ;;  %v1446_v59 = vpop.permute.xlu1 %1445 }
0x123d   :  { %v1353_v49 = vsel %vm405_vm8, %v1348_v6, 0 }
0x123e   :  { %2397 = vmatpush3.bf16.msra.mxu1 %v1353_v49  ;;  %v1297_v50 = vpack.c.bf16 %v1295_v3, %v1295_v3 }
0x123f   :  { %2408 = vmatprep.subr.bf16.mxu1 %v2626_v2 }
0x1240   :  { %2393 = vmatmul.mubr.msk.bf16.vlgmr.msra.gmra.mrb[28].mxu0 %vm375_vm7, %v1297_v50  ;;  %v1396_v57 = vpop.permute.xlu0 %1395 }
0x1241   :  { %2403 = vmatpush3.bf16.xpose.msra.mxu0 %v1403_v52  ;;  %2404 = vmatprep.mubr.msk.bf16.mxu0 %vm2627_vm0, %v2626_v2  ;;  %v2519_v52 = vld [vmem:[%s3211_s4 + $0x10] sm:$0xff]  }
0x1242   :  { %2414 = vmatprep.subr.bf16.mxu0 %v2626_v2 }
0x1243   :  { %v2576_v53 = vpop.eup %2575 }
0x1244   :  { %v1296_v54 = vmul.f32 %v2576_v53, %v2572_v37  ;;  %v2520_v53 = vld [vmem:[%s3211_s4 + $0x18] sm:$0xff]  }
0x1246   :  { %v1298_v56 = vpack.c.bf16 %v1296_v54, %v1296_v54 }
0x1248   :  { %2399 = vmatmul.mubr.msk.bf16.vlgmr.msra.gmra.mrb[36].mxu1 %vm375_vm7, %v1298_v56  ;;  %2405 = vmatmul.mubr.msk.bf16.vlgmr.msra.gmra.mrb[32].mxu0 %vm275_vm5, %v1396_v57 }
0x1249   :  { %2409 = vmatpush3.bf16.xpose.msra.mxu1 %v1453_v58  ;;  %2410 = vmatprep.mubr.msk.bf16.mxu1 %vm2627_vm0, %v2626_v2 }
0x124a   :  { %2420 = vmatprep.subr.bf16.mxu1 %v2626_v2  ;;  %2416 = vmatprep.mubr.msk.bf16.mxu0 %vm2627_vm0, %v2626_v2 }
0x1250   :  { %2411 = vmatmul.mubr.msk.bf16.vlgmr.msra.gmra.mrb[40].mxu1 %vm275_vm5, %v1446_v59 }
0x1251   :  { %2422 = vmatprep.mubr.msk.bf16.mxu1 %vm2627_vm0, %v2626_v2 }
0x1313   :  { %v3065_v61 = vpop.f32.mrb[28].mxu0 }
0x1314   :  { %v2394_v1 = vpop.f32.mrb[29].mxu0 }
0x1315   :  { %v1344_v5 = vpop.f32.mrb[30].mxu0 }
0x1316   :  { %v2395_v13 = vpop.f32.mrb[31].mxu0 }
0x131b   :  { %v3067_v15 = vpop.f32.mrb[36].mxu1  ;;  %v1439_v60 = vpop.f32.mrb[32].mxu0 }
0x131c   :  { %v1495_v62 = vmul.f32 0.25, %v1439_v60  ;;  %v2400_v10 = vpop.f32.mrb[37].mxu1  ;;  %v2406_v19 = vpop.f32.mrb[33].mxu0 }
0x131d   :  { %v1392_v21 = vpop.f32.mrb[38].mxu1  ;;  %v1442_v16 = vpop.f32.mrb[34].mxu0 }
0x131e   :  { %v2401_v22 = vpop.f32.mrb[39].mxu1  ;;  %v2407_v11 = vpop.f32.mrb[35].mxu0  ;;  %v1497_v24 = vadd.f32 %v1495_v62, %v2811_v12 }
0x131f   :  { %v1638_v22 = vrot.slane %v2995_v41, %v738_v8 }
0x1320   :  { %v1499_v26 = vsel %vm375_vm7, %v1497_v24, -inf }
0x1321   :  { %1500 = vmax.xlane.f32.xlu0 %v1499_v26 }
0x1323   :  { %v1489_v20 = vpop.f32.mrb[40].mxu1 }
0x1324   :  { %v1496_v47 = vmul.f32 0.25, %v1489_v20  ;;  %v2412_v27 = vpop.f32.mrb[41].mxu1 }
0x1325   :  { %v1492_v14 = vpop.f32.mrb[42].mxu1 }
0x1326   :  { %v2413_v23 = vpop.f32.mrb[43].mxu1  ;;  %v1498_v9 = vadd.f32 %v1496_v47, %v2811_v12 }
0x1328   :  { %v1502_v28 = vsel %vm375_vm7, %v1498_v9, -inf }
0x1329   :  { %1503 = vmax.xlane.f32.xlu1 %v1502_v28 }
0x133a   :  { %1523 = vrot.lane.b32.xlu1 %v3007_v0, %s2634_s0 }
0x13ae   :  { %v1501_v29 = vpop.xlane.xlu0 %1500 }
0x13af   :  { %v1505_v18 = vsub.f32 %v1497_v24, %v1501_v29 }
0x13b1   :  { %v1507_v30 = vmul.f32 1.442695, %v1505_v18 }
0x13b3   :  { %2577 = vpow2.f32 %v1507_v30 }
0x13b6   :  { %v1504_v31 = vpop.xlane.xlu1 %1503 }
0x13b7   :  { %v1506_v32 = vsub.f32 %v1498_v9, %v1504_v31 }
0x13b9   :  { %v1509_v33 = vmul.f32 1.442695, %v1506_v32 }
0x13ba   :  { %v1524_v34 = vpop.permute.xlu1 %1523 }
0x13bb   :  { %2579 = vpow2.f32 %v1509_v33  ;;  %v1529_v35 = vsel %vm405_vm8, %v1524_v34, 0  ;;  %v2521_v33 = vld [vmem:[%s3212_s5 + $0x10] sm:$0xff]   ;;  %v2522_v34 = vld [vmem:[%s3212_s5 + $0x18] sm:$0xff]  }
0x13bc   :  { %2415 = vmatpush3.bf16.msra.mxu0 %v1529_v35 }
0x13bd   :  { %v2578_v36 = vpop.eup %2577  ;;  %2426 = vmatprep.subr.bf16.mxu0 %v2626_v2 }
0x13be   :  { %v1511_v12 = vsel %vm375_vm7, %v2578_v36, 0.0 }
0x13bf   :  { %1512 = vadd.xlane.f32.xlu0 %v1511_v12 }
0x13c5   :  { %v2580_v37 = vpop.eup %2579 }
0x13c6   :  { %v1514_v0 = vsel %vm375_vm7, %v2580_v37, 0.0 }
0x13c7   :  { %1515 = vadd.xlane.f32.xlu0 %v1514_v0 }
0x13dd   :  { %1571 = vrot.lane.b32.xlu0 %v3009_v7, %s2634_s0 }
0x144c   :  { %v1513_v39 = vpop.xlane.xlu0 %1512 }
0x144d   :  { %2581 = vrcp.f32 %v1513_v39 }
0x1454   :  { %v1516_v40 = vpop.xlane.xlu0 %1515 }
0x1455   :  { %2583 = vrcp.f32 %v1516_v40  ;;  %v1726_v40 = vrot.slane %v2995_v41, %v826_v38  ;;  %v2523_v38 = vld [vmem:[%s3213_s6 + $0x40] sm:$0xff]  }
0x1457   :  { %v2582_v43 = vpop.eup %2581 }
0x1458   :  { %v1519_v44 = vmul.f32 %v2582_v43, %v2578_v36  ;;  %v1572_v3 = vpop.permute.xlu0 %1571 }
0x1459   :  { %v1577_v6 = vsel %vm405_vm8, %v1572_v3, 0 }
0x145a   :  { %2421 = vmatpush3.bf16.msra.mxu1 %v1577_v6  ;;  %v1521_v48 = vpack.c.bf16 %v1519_v44, %v1519_v44 }
0x145b   :  { %2434 = vmatprep.subr.bf16.mxu1 %v2626_v2 }
0x145c   :  { %2417 = vmatmul.mubr.msk.bf16.vlgmr.msra.gmra.mrb[36].mxu0 %vm375_vm7, %v1521_v48 }
0x145d   :  { %2430 = vmatprep.mubr.msk.bf16.mxu0 %vm2627_vm0, %v2626_v2  ;;  %2427 = vmatpush3.bf16.msra.mxu0 %v2519_v52 }
0x145e   :  { %2428 = vmatprep.subr.bf16.mxu0 %v2626_v2 }
0x145f   :  { %v2584_v49 = vpop.eup %2583 }
0x1460   :  { %v1520_v7 = vmul.f32 %v2584_v49, %v2580_v37  ;;  %v1732_v49 = vrot.slane %v2995_v41, %v832_v42  ;;  %v2524_v42 = vld [vmem:[%s3213_s6 + $0x48] sm:$0xff]  }
0x1461   :  { %2429 = vmatpush3.bf16.msra.mxu0 %v2520_v53 }
0x1462   :  { %v1522_v50 = vpack.c.bf16 %v1520_v7, %v1520_v7  ;;  %2442 = vmatprep.subr.bf16.mxu0 %v2626_v2 }
0x1464   :  { %2423 = vmatmul.mubr.msk.bf16.vlgmr.msra.gmra.mrb[44].mxu1 %vm375_vm7, %v1522_v50 }
0x1465   :  { %2438 = vmatprep.mubr.msk.bf16.mxu1 %vm2627_vm0, %v2626_v2  ;;  %2435 = vmatpush3.bf16.msra.mxu1 %v2521_v33 }
0x1466   :  { %2436 = vmatprep.subr.bf16.mxu1 %v2626_v2 }
0x1469   :  { %2437 = vmatpush3.bf16.msra.mxu1 %v2522_v34 }
0x146a   :  { %2462 = vmatprep.subr.bf16.mxu1 %v2626_v2 }
0x152f   :  { %v1565_v54 = vpop.f32.mrb[36].mxu0 }
0x1530   :  { %v2418_v55 = vpop.f32.mrb[37].mxu0 }
0x1531   :  { %v1568_v56 = vpop.f32.mrb[38].mxu0  ;;  %v2526_v55 = vld [vmem:[%s3213_s6 + $0x58] sm:$0xff]  }
0x1532   :  { %v2419_v57 = vpop.f32.mrb[39].mxu0  ;;  %v2527_v56 = vld [vmem:[%s3213_s6 + $0x60] sm:$0xff]  }
0x1533   :  { %v2528_v57 = vld [vmem:[%s3213_s6 + $0x68] sm:$0xff]  }
0x1537   :  { %v1613_v58 = vpop.f32.mrb[44].mxu1 }
0x1538   :  { %v2490_v59 = vpack.i.bf16 %v1613_v58, %v1565_v54  ;;  %v2424_v1 = vpop.f32.mrb[45].mxu1  ;;  %v2525_v54 = vld [vmem:[%s3213_s6 + $0x50] sm:$0xff]  }
0x1539   :  { %v1616_v5 = vpop.f32.mrb[46].mxu1  ;;  %v2529_v58 = vld [vmem:[%s3213_s6 + $0x70] sm:$0xff]   ;;  %v1744_v1 = vrot.slane %v2995_v41, %v843_v63 }
0x153a   :  { %2491 = vrot.lane.b32.xlu1 %v2490_v59, %s2635_s23  ;;  %v2425_v13 = vpop.f32.mrb[47].mxu1  ;;  %v2530_v59 = vld [vmem:[%s3213_s6 + $0x78] sm:$0xff]  }
0x15ac   :  { %v2492_v60 = vpop.permute.xlu1 %2491 }
0x15ad   :  { %v2494_v62 = vunpack.i.h.bf16 %v2492_v60  ;;  %v2493_v10 = vunpack.i.l.bf16 %v2492_v60 }
0x15af   :  { %v1628_v19 = vsel %vm275_vm5, %v3067_v15, %v2494_v62  ;;  %v1627_v21 = vsel %vm275_vm5, %v3065_v61, %v2493_v10 }
0x15b0   :  { %v1629_v16 = vpack.c.bf16 %v1628_v19, %v1627_v21 }
0x15b2   :  { %2431 = vmatmul.mubr.msk.bf16.vlgmr.msra.gmra.mrb[40].mxu0 %vm165_vm4, %v1629_v16 }
0x15b3   :  { %2458 = vmatprep.mubr.msk.bf16.mxu0 %vm2627_vm0, %v2626_v2  ;;  %2443 = vmatpush3.bf16.msra.mxu0 %v2523_v38 }
0x15b4   :  { %2444 = vmatprep.subr.bf16.mxu0 %v2626_v2 }
0x15b7   :  { %2445 = vmatpush3.bf16.msra.mxu0 %v2524_v42 }
0x15b8   :  { %2446 = vmatprep.subr.bf16.mxu0 %v2626_v2 }
0x15bb   :  { %2447 = vmatpush3.bf16.msra.mxu0 %v2525_v54 }
0x15bc   :  { %2448 = vmatprep.subr.bf16.mxu0 %v2626_v2 }
0x15bf   :  { %2449 = vmatpush3.bf16.msra.mxu0 %v2526_v55 }
0x15c0   :  { %2450 = vmatprep.subr.bf16.mxu0 %v2626_v2 }
0x15c3   :  { %2451 = vmatpush3.bf16.msra.mxu0 %v2527_v56 }
0x15c4   :  { %2452 = vmatprep.subr.bf16.mxu0 %v2626_v2 }
0x15c7   :  { %2453 = vmatpush3.bf16.msra.mxu0 %v2528_v57 }
0x15c8   :  { %2454 = vmatprep.subr.bf16.mxu0 %v2626_v2 }
0x15cb   :  { %2455 = vmatpush3.bf16.msra.mxu0 %v2529_v58 }
0x15cc   :  { %2456 = vmatprep.subr.bf16.mxu0 %v2626_v2 }
0x15cf   :  { %2457 = vmatpush3.bf16.msra.mxu0 %v2530_v59 }
0x1685   :  { %v1688_v11 = vpop.f32.mrb[40].mxu0 }
0x1686   :  { %v1689_v24 = vadd.f32 %v1688_v11, %v1638_v22  ;;  %v2432_v26 = vpop.f32.mrb[41].mxu0 }
0x1687   :  { %v1691_v20 = vpop.f32.mrb[42].mxu0 }
0x1688   :  { %v3109_v47 = vadd.f32 %v1689_v24, %v2971_v4  ;;  %v1692_v15 = vadd.f32 %v1691_v20, %v1638_v22  ;;  %v2433_v27 = vpop.f32.mrb[43].mxu0 }
0x168a   :  { %v3112_v61 = vadd.f32 %v1692_v15, %v2974_v25  ;;  %v1697_v14 = vsel %vm165_vm4, %v3109_v47, 0.0 }
0x168b   :  { %1698 = vadd.xlane.f32.xlu1 %v1697_v14 }
0x168c   :  { %v1700_v23 = vsel %vm165_vm4, %v3112_v61, 0.0 }
0x168d   :  { %1701 = vadd.xlane.f32.xlu0 %v1700_v23 }
0x1718   :  { %v1699_v8 = vpop.xlane.xlu1 %1698 }
0x1719   :  { %v1703_v9 = vmul.f32 0.03125, %v1699_v8 }
0x171a   :  { %v1702_v28 = vpop.xlane.xlu0 %1701 }
0x171b   :  { %v1705_v29 = vsub.f32 %v3109_v47, %v1703_v9  ;;  %v1704_v4 = vmul.f32 0.03125, %v1702_v28 }
0x171d   :  { %v1706_v18 = vsub.f32 %v3112_v61, %v1704_v4  ;;  %v1707_v30 = vmul.f32 %v1705_v29, %v1705_v29 }
0x171f   :  { %v1709_v25 = vsel %vm165_vm4, %v1707_v30, 0.0  ;;  %v1708_v31 = vmul.f32 %v1706_v18, %v1706_v18 }
0x1720   :  { %1710 = vadd.xlane.f32.xlu0 %v1709_v25 }
0x1721   :  { %v1712_v32 = vsel %vm165_vm4, %v1708_v31, 0.0 }
0x1722   :  { %1713 = vadd.xlane.f32.xlu1 %v1712_v32 }
0x17ad   :  { %v1711_v35 = vpop.xlane.xlu0 %1710 }
0x17ae   :  { %v1715_v36 = vmul.f32 0.03125, %v1711_v35 }
0x17af   :  { %v1714_v12 = vpop.xlane.xlu1 %1713 }
0x17b0   :  { %v1717_v37 = vadd.f32 1e-05, %v1715_v36  ;;  %v1716_v0 = vmul.f32 0.03125, %v1714_v12 }
0x17b2   :  { %2585 = vrsqrt.f32 %v1717_v37  ;;  %v1718_v39 = vadd.f32 1e-05, %v1716_v0 }
0x17b4   :  { %2587 = vrsqrt.f32 %v1718_v39 }
0x17bc   :  { %v2586_v43 = vpop.eup %2585 }
0x17bd   :  { %v1721_v44 = vmul.f32 %v2586_v43, %v1705_v29 }
0x17be   :  { %v2588_v3 = vpop.eup %2587 }
0x17bf   :  { %v1727_v6 = vmul.f32 %v1726_v40, %v1721_v44  ;;  %v1722_v48 = vmul.f32 %v2588_v3, %v1706_v18 }
0x17c1   :  { %v1728_v7 = vmul.f32 %v1726_v40, %v1722_v48  ;;  %v1733_v50 = vadd.f32 %v1732_v49, %v1727_v6 }
0x17c3   :  { %v1734_v52 = vadd.f32 %v1732_v49, %v1728_v7 }
0x17c5   :  { %v1735_v53 = vpack.c.bf16 %v1734_v52, %v1733_v50 }
0x17c7   :  { %2439 = vmatmul.mubr.msk.bf16.vlgmr.msra.gmra.mrb[48].mxu1 %vm165_vm4, %v1735_v53 }
0x17c8   :  { %2466 = vmatprep.mubr.msk.bf16.mxu1 %vm2627_vm0, %v2626_v2 }
0x189a   :  { %v1794_v5 = vpop.f32.mrb[48].mxu1 }
0x189b   :  { %v1795_v13 = vadd.f32 %v1794_v5, %v1744_v1  ;;  %v2440_v60 = vpop.f32.mrb[49].mxu1 }
0x189c   :  { %v1797_v62 = vpop.f32.mrb[50].mxu1  ;;  %v1876_v60 = vrot.slane %v2995_v41, %v974_v17 }
0x189d   :  { %v1803_v10 = vmul.f32 0.70710677, %v1795_v13  ;;  %v1798_v19 = vadd.f32 %v1797_v62, %v1744_v1  ;;  %v2441_v21 = vpop.f32.mrb[51].mxu1  ;;  %v1801_v56 = vmul.f32 0.5, %v1795_v13 }
0x189f   :  { %v1805_v16 = vand.u32 2147483647, %v1803_v10  ;;  %v1804_v22 = vmul.f32 0.70710677, %v1798_v19  ;;  %vm1845_vm11 = vcmp.ge.f32.partialorder %v1803_v10, 0.0  ;;  %v1802_v57 = vmul.f32 0.5, %v1798_v19 }
0x18a1   :  { %v1807_v11 = vmul.f32 0.3275911, %v1805_v16  ;;  %v1806_v24 = vand.u32 2147483647, %v1804_v22  ;;  %v1833_v27 = vsub.f32 0.0, %v1805_v16  ;;  %vm1846_vm12 = vcmp.ge.f32.partialorder %v1804_v22, 0.0 }
0x18a3   :  { %v1809_v26 = vadd.f32 1.0, %v1807_v11  ;;  %v1808_v20 = vmul.f32 0.3275911, %v1806_v24  ;;  %v1834_v14 = vsub.f32 0.0, %v1806_v24  ;;  %v1835_v63 = vmul.f32 %v1833_v27, %v1805_v16 }
0x18a5   :  { %2589 = vrcp.f32 %v1809_v26  ;;  %v1810_v15 = vadd.f32 1.0, %v1808_v20  ;;  %v1836_v29 = vmul.f32 %v1834_v14, %v1806_v24  ;;  %v1837_v4 = vmul.f32 1.442695, %v1835_v63 }
0x18a7   :  { %2591 = vrcp.f32 %v1810_v15  ;;  %v1839_v32 = vmul.f32 1.442695, %v1836_v29 }
0x18a8   :  { %2593 = vpow2.f32 %v1837_v4 }
0x18a9   :  { %2595 = vpow2.f32 %v1839_v32 }
0x18af   :  { %v2590_v23 = vpop.eup %2589 }
0x18b0   :  { %v1815_v8 = vmul.f32 1.0614054, %v2590_v23 }
0x18b1   :  { %v2592_v9 = vpop.eup %2591 }
0x18b2   :  { %v1817_v28 = vadd.f32 -1.4531521, %v1815_v8  ;;  %v1816_v18 = vmul.f32 1.0614054, %v2592_v9  ;;  %v2594_v44 = vpop.eup %2593  ;;  %v2532_v8 = vld [vmem:[%s3214_s7 + $0x8] sm:$0xff]  }
0x18b3   :  { %v2596_v49 = vpop.eup %2595 }
0x18b4   :  { %v1819_v30 = vmul.f32 %v2590_v23, %v1817_v28  ;;  %v1818_v25 = vadd.f32 -1.4531521, %v1816_v18 }
0x18b6   :  { %v1821_v31 = vadd.f32 1.4214138, %v1819_v30  ;;  %v1820_v33 = vmul.f32 %v2592_v9, %v1818_v25  ;;  %v36_v25 = vld [vmem:[%s3215_s8 + $0x10] sm:$0x3] }
0x18b8   :  { %v1823_v34 = vmul.f32 %v2590_v23, %v1821_v31  ;;  %v1822_v35 = vadd.f32 1.4214138, %v1820_v33  ;;  %v1997_v31 = vrot.slane %v36_v25, %v2768_v46 }
0x18ba   :  { %v1825_v36 = vadd.f32 -0.28449672, %v1823_v34  ;;  %v1824_v12 = vmul.f32 %v2592_v9, %v1822_v35 }
0x18bc   :  { %v1827_v37 = vmul.f32 %v2590_v23, %v1825_v36  ;;  %v1826_v0 = vadd.f32 -0.28449672, %v1824_v12  ;;  %v2003_v36 = vrot.slane %v36_v25, %v2778_v51 }
0x18be   :  { %v1829_v39 = vadd.f32 0.2548296, %v1827_v37  ;;  %v1828_v40 = vmul.f32 %v2592_v9, %v1826_v0 }
0x18c0   :  { %v1831_v43 = vmul.f32 %v2590_v23, %v1829_v39  ;;  %v1830_v3 = vadd.f32 0.2548296, %v1828_v40 }
0x18c2   :  { %v1841_v6 = vmul.f32 %v2594_v44, %v1831_v43  ;;  %v1832_v48 = vmul.f32 %v2592_v9, %v1830_v3 }
0x18c4   :  { %v1843_v7 = vsub.f32 1.0, %v1841_v6  ;;  %v1842_v50 = vmul.f32 %v2596_v49, %v1832_v48 }
0x18c6   :  { %v1847_v52 = vsub.f32 0.0, %v1843_v7  ;;  %v1844_v53 = vsub.f32 1.0, %v1842_v50 }
0x18c8   :  { %v1849_v38 = vsel %vm1845_vm11, %v1843_v7, %v1847_v52  ;;  %v1848_v42 = vsub.f32 0.0, %v1844_v53 }
0x18c9   :  { %v1851_v54 = vadd.f32 1.0, %v1849_v38 }
0x18ca   :  { %v1850_v55 = vsel %vm1846_vm12, %v1844_v53, %v1848_v42 }
0x18cb   :  { %v1852_v58 = vadd.f32 1.0, %v1850_v55  ;;  %v1853_v59 = vmul.f32 %v1851_v54, %v1801_v56 }
0x18cd   :  { %v1854_v1 = vmul.f32 %v1852_v58, %v1802_v57 }
0x18cf   :  { %v1855_v5 = vpack.c.bf16 %v1854_v1, %v1853_v59 }
0x18d1   :  { %2459 = vmatmul.mubr.bf16.vlgmr.msra.gmra.mrb[44].mxu0 %v1855_v5 }
0x19a4   :  { %v1959_v62 = vpop.f32.mrb[44].mxu0 }
0x19a5   :  { %v1960_v21 = vadd.f32 %v1959_v62, %v1876_v60  ;;  %v2460_v10 = vpop.f32.mrb[45].mxu0 }
0x19a6   :  { %v1962_v16 = vpop.f32.mrb[46].mxu0 }
0x19a7   :  { %v1963_v11 = vadd.f32 %v1962_v16, %v1876_v60  ;;  %v2461_v24 = vpop.f32.mrb[47].mxu0  ;;  %v1966_v22 = vadd.f32 %v1960_v21, %v3109_v47 }
0x19a9   :  { %v1968_v13 = vsel %vm165_vm4, %v1966_v22, 0.0  ;;  %v1967_v19 = vadd.f32 %v1963_v11, %v3112_v61  ;;  %v2531_v61 = vld [vmem:[%s3214_s7] sm:$0xff]   ;;  %s2636_s7 = smov [#allocation2]  }
0x19aa   :  { %1969 = vadd.xlane.f32.xlu0 %v1968_v13  ;;  %2463 = vmatpush3.bf16.msra.mxu1 %v2531_v61  ;;  %s2074_s16 = sshll.u32 %s2636_s7, 4  ;;  %s2075_s16 = int_to_ptr.vmem [resolvable:$true] %s2074_s16 }
0x19ab   :  { %v1971_v26 = vsel %vm165_vm4, %v1967_v19, 0.0  ;;  %2464 = vmatprep.subr.bf16.mxu1 %v2626_v2  ;;  %s2601_s8 = scalar_lea.vmem %s2075_s16, 256  ;;  %p2606_p1 = scmp.lt.s32.totalorder %s2075_s16, %s2075_s16 }
0x19ac   :  { %1972 = vadd.xlane.f32.xlu1 %v1971_v26  ;;  %p2602_p0 = scmp.ne.s32.totalorder %s2075_s16, %s2601_s8  ;;  %p2607_p2 = scmp.lt.s32.totalorder %s2601_s8, %s2601_s8 }
0x19ae   :  { %2465 = vmatpush3.bf16.msra.mxu1 %v2532_v8  ;;  %p2608_p3 = por %p2607_p2, %p2606_p1 }
0x19b0   :  { %p2609_p4 = pnand %p2608_p3, %p2602_p0 }
0x1a37   :  { %v1970_v20 = vpop.xlane.xlu0 %1969 }
0x1a38   :  { %v1974_v45 = vmul.f32 0.03125, %v1970_v20 }
0x1a39   :  { %v1973_v15 = vpop.xlane.xlu1 %1972 }
0x1a3a   :  { %v1976_v17 = vsub.f32 %v1966_v22, %v1974_v45  ;;  %v1975_v41 = vmul.f32 0.03125, %v1973_v15 }
0x1a3c   :  { %v1977_v27 = vsub.f32 %v1967_v19, %v1975_v41  ;;  %v1978_v14 = vmul.f32 %v1976_v17, %v1976_v17 }
0x1a3e   :  { %v1980_v23 = vsel %vm165_vm4, %v1978_v14, 0.0  ;;  %v1979_v63 = vmul.f32 %v1977_v27, %v1977_v27 }
0x1a3f   :  { %1981 = vadd.xlane.f32.xlu0 %v1980_v23 }
0x1a40   :  { %v1983_v47 = vsel %vm165_vm4, %v1979_v63, 0.0 }
0x1a41   :  { %1984 = vadd.xlane.f32.xlu1 %v1983_v47 }
0x1acc   :  { %v1982_v9 = vpop.xlane.xlu0 %1981 }
0x1acd   :  { %v1986_v28 = vmul.f32 0.03125, %v1982_v9 }
0x1ace   :  { %v1985_v29 = vpop.xlane.xlu1 %1984 }
0x1acf   :  { %v1988_v4 = vadd.f32 1e-05, %v1986_v28  ;;  %v1987_v18 = vmul.f32 0.03125, %v1985_v29 }
0x1ad1   :  { %2597 = vrsqrt.f32 %v1988_v4  ;;  %v1989_v30 = vadd.f32 1e-05, %v1987_v18 }
0x1ad3   :  { %2599 = vrsqrt.f32 %v1989_v30 }
0x1adb   :  { %v2598_v2 = vpop.eup %2597 }
0x1adc   :  { %v1992_v32 = vmul.f32 %v2598_v2, %v1976_v17 }
0x1add   :  { %v2600_v33 = vpop.eup %2599 }
0x1ade   :  { %v1998_v34 = vmul.f32 %v1997_v31, %v1992_v32  ;;  %v1993_v35 = vmul.f32 %v2600_v33, %v1977_v27 }
0x1ae0   :  { %v1999_v12 = vmul.f32 %v1997_v31, %v1993_v35  ;;  %v2004_v37 = vadd.f32 %v2003_v36, %v1998_v34 }
0x1ae2   :  { %v2005_v0 = vadd.f32 %v2003_v36, %v1999_v12 }
0x1ae4   :  { %v2006_v39 = vpack.c.bf16 %v2005_v0, %v2004_v37 }
0x1ae6   :  { %2467 = vmatmul.mubr.msk.bf16.vlgmr.msra.gmra.mrb[52].mxu1 %vm165_vm4, %v2006_v39 }
0x1bb9   :  { %v2060_v40 = vpop.f32.mrb[52].mxu1 }
0x1bba   :  { %2067 = vst [vmem:[#allocation2] sm:$0xff] %v2060_v40  ;;  %v2468_v43 = vpop.f32.mrb[53].mxu1 }
0x1bbb   :  { %v2063_v46 = vpop.f32.mrb[54].mxu1 }
0x1bbc   :  { %2068 = vst [vmem:[#allocation2 + $0x8] sm:$0xff] %v2063_v46  ;;  %v2469_v44 = vpop.f32.mrb[55].mxu1 }
0x1bbd   :  { %2612 = shalt.err (!%p2609_p4)
}
0x1bbe   :  { %s2613_s18 = scalar_lea.hbm %s3216_s9, 256 }
0x1bbf   :  { %p2614_p5 = scmp.ne.s32.totalorder %s3216_s9, %s2613_s18  ;;  %p2617_p6 = scmp.lt.u32.totalorder %s2613_s18, %s3216_s9 }
0x1bc1   :  { %p2619_p7 = pnand %p2617_p6, %p2614_p5 }
0x1bc3   :  { %2622 = shalt.err (!%p2619_p7)
}
0x1bc4   :  { %s2637_s10 = smov 128   ;;  %s2638_s11 = smov 8  }
0x1bc5   :  { %2080 = dma.vmem_to_hbm [thread:$0]  %s2075_s16, 256, %s3216_s9, [#allocation3], %s2637_s10, %s2637_s10, %s2638_s11  }
0x1bc6   :  { %2623 = dma.done.wait [#allocation3], 256  }
0x1bc7   :  { %2624 = vsyncadd [#allocation3], 4294967040 }
0x1bc8   :  { %2084 = vsyncpa [#allocation3], 1 }

</bundles_post_ra>
